<compile_context>
chip_gen: v6e
topology: v6e:2x2x1
jax: 0.10.0
libtpu: 0.0.40
codegen_flags: <defaults>
</compile_context>

<pallas_src>
import math

import jax
import jax.numpy as jnp
from jax.experimental import pallas as pl
from jax.experimental.pallas import tpu as pltpu


# ----------------------------------------------------------------------------
# Pallas kernel: all decoder layers, one (batch, query-tile) block
# ----------------------------------------------------------------------------
def _layer_norm(x, gamma, beta, eps=1e-5):
    mean = jnp.mean(x, axis=-1, keepdims=True)
    var = jnp.mean((x - mean) ** 2, axis=-1, keepdims=True)
    return (x - mean) * jax.lax.rsqrt(var + eps) * gamma + beta


def fused_decoder_kernel(tgt_ref, qpos_ref, kt_ref, v_ref,
                         wq_ref, wo_ref, w1_ref, w2_ref, vec_ref,
                         out_ref):
    l = pl.program_id(2)
    num_layers = pl.num_programs(2)

    C = tgt_ref.shape[-1]
    Dff = w1_ref.shape[-1]

    # Layer 0: seed the resident activation.  The output block index is
    # constant over the layer axis, so out_ref stays in VMEM across layers.
    @pl.when(l == 0)
    def _():
        out_ref[0] = tgt_ref[0]

    x = out_ref[0]                      # (TQ, C) f32, resident activation
    qpos = qpos_ref[0]                  # (TQ, C) f32
    kt = kt_ref[0, 0]                   # (C, M)  bf16, pre-transposed keys
    v = v_ref[0, 0]                     # (M, C)  bf16

    vecs = vec_ref[0]                   # (8, P) f32 packed per-layer vectors
    g1, b1 = vecs[0:1, :C], vecs[1:2, :C]
    g2, b2 = vecs[2:3, :C], vecs[3:4, :C]
    bf2 = vecs[4:5, :C]
    bf1 = vecs[5:6, :Dff]

    # --- cross attention (1/sqrt(C) scale folded into wq in the wrapper) ---
    q = jnp.dot((x + qpos).astype(jnp.bfloat16), wq_ref[0],
                preferred_element_type=jnp.float32)            # (TQ, C)
    scores = jnp.dot(q.astype(jnp.bfloat16), kt,
                     preferred_element_type=jnp.float32)       # (TQ, M)
    scores = scores - jnp.max(scores, axis=-1, keepdims=True)
    p = jnp.exp(scores)
    p = p * pl.reciprocal(jnp.sum(p, axis=-1, keepdims=True), approx=True)
    ctx = jnp.dot(p.astype(jnp.bfloat16), v,
                  preferred_element_type=jnp.float32)          # (TQ, C)
    attn = jnp.dot(ctx.astype(jnp.bfloat16), wo_ref[0],
                   preferred_element_type=jnp.float32)

    # --- add & norm (f32) ---
    x1 = _layer_norm(x + attn, g1, b1)

    # --- FFN (bf16 MXU, f32 accumulate) ---
    h = jnp.maximum(
        jnp.dot(x1.astype(jnp.bfloat16), w1_ref[0],
                preferred_element_type=jnp.float32) + bf1, 0.0)
    ffn = jnp.dot(h.astype(jnp.bfloat16), w2_ref[0],
                  preferred_element_type=jnp.float32) + bf2

    # --- add & norm (f32) ---
    out_ref[0] = _layer_norm(x1 + ffn, g2, b2)


def run_fused_decoder(output, qpos, kt_all, v_all, wq, wo, w1, w2, vec, tq):
    """Fused L-layer decoder.

    output/qpos: (B, N, C) f32, kt_all: (L, B, C, M) bf16, v_all: (L, B, M, C)
    bf16, weights stacked over layers, vec: (L, 8, P) f32.  Returns (B, N, C).
    """
    B, N, C = output.shape
    L, _, _, M = kt_all.shape
    Dff = w1.shape[-1]
    P = vec.shape[-1]
    assert N % tq == 0
    n_tiles = N // tq

    seq_spec = pl.BlockSpec((1, tq, C), lambda b, t, l: (b, t, 0))

    return pl.pallas_call(
        fused_decoder_kernel,
        out_shape=jax.ShapeDtypeStruct((B, N, C), jnp.float32),
        grid=(B, n_tiles, L),
        in_specs=[
            seq_spec,                                                   # tgt
            seq_spec,                                                   # query_pos
            pl.BlockSpec((1, 1, C, M), lambda b, t, l: (l, b, 0, 0)),   # k^T
            pl.BlockSpec((1, 1, M, C), lambda b, t, l: (l, b, 0, 0)),   # v
            pl.BlockSpec((1, C, C),   lambda b, t, l: (l, 0, 0)),       # wq (scaled)
            pl.BlockSpec((1, C, C),   lambda b, t, l: (l, 0, 0)),       # wo
            pl.BlockSpec((1, C, Dff), lambda b, t, l: (l, 0, 0)),       # w1
            pl.BlockSpec((1, Dff, C), lambda b, t, l: (l, 0, 0)),       # w2
            pl.BlockSpec((1, 8, P),   lambda b, t, l: (l, 0, 0)),       # packed vectors
        ],
        out_specs=seq_spec,
        compiler_params=pltpu.CompilerParams(
            dimension_semantics=("parallel", "parallel", "arbitrary"),
            vmem_limit_bytes=32 * 1024 * 1024),
    )(output, qpos, kt_all, v_all, wq, wo, w1, w2, vec)


# ----------------------------------------------------------------------------
# Decoder wrapper (glue, plain JAX) — mirrors the PyTorch module
# ----------------------------------------------------------------------------
def get_valid_ratio(mask):
    _, H, W = mask.shape
    valid_H = jnp.sum(mask[:, :, 0], 1)
    valid_W = jnp.sum(mask[:, 0, :], 1)
    valid_ratio_h = valid_H.astype(jnp.float32) / H
    valid_ratio_w = valid_W.astype(jnp.float32) / W
    return jnp.stack([valid_ratio_w, valid_ratio_h], -1)   # (1, 2)


def get_reference_points(spatial_shapes, valid_ratios):
    # spatial_shapes: list of (H, W) python ints; valid_ratios: (1, L, 2)
    reference_points_list = []
    for lvl, (H_, W_) in enumerate(spatial_shapes):
        ref_y, ref_x = jnp.meshgrid(
            jnp.linspace(0.5, H_ - 0.5, H_, dtype=jnp.float32),
            jnp.linspace(0.5, W_ - 0.5, W_, dtype=jnp.float32),
            indexing='ij')
        ref_y = ref_y.reshape(-1)[None] / (valid_ratios[:, None, lvl, 1] * H_)
        ref_x = ref_x.reshape(-1)[None] / (valid_ratios[:, None, lvl, 0] * W_)
        ref = jnp.stack((ref_x, ref_y), -1)
        reference_points_list.append(ref)
    reference_points = jnp.concatenate(reference_points_list, 1)
    reference_points = reference_points[:, :, None] * valid_ratios[:, None]
    return reference_points    # (1, sum(H*W), L, 2)


class DeformableTransformerDecoderPallas:
    def __init__(self, layer_params, num_layers, return_intermediate=False,
                 tq=256):
        if isinstance(layer_params, dict):
            layers = [layer_params] * num_layers
        else:
            layers = list(layer_params)
        assert len(layers) == num_layers
        self.num_layers = num_layers
        self.return_intermediate = return_intermediate
        self.tq = tq
        self.stacked = self._stack_layers(layers)

    @staticmethod
    def _stack_layers(layers):
        C = layers[0]['wq'].shape[0]
        Dff = layers[0]['w1'].shape[1]
        P = ((max(C, Dff) + 127) // 128) * 128

        def pad1(v):
            return jnp.pad(v.astype(jnp.float32), (0, P - v.shape[0]))

        vec_rows = []
        for p in layers:
            vec_rows.append(jnp.stack([
                pad1(p['g1']), pad1(p['b1']), pad1(p['g2']), pad1(p['b2']),
                pad1(p['bf2']), pad1(p['bf1']),
                jnp.zeros((P,), jnp.float32), jnp.zeros((P,), jnp.float32)]))

        scale = 1.0 / math.sqrt(C)
        return dict(
            # attention scale folded into wq
            wq=(jnp.stack([p['wq'] for p in layers]) * scale).astype(jnp.bfloat16),
            wk=jnp.stack([p['wk'] for p in layers]).astype(jnp.float32),
            wv=jnp.stack([p['wv'] for p in layers]).astype(jnp.float32),
            wo=jnp.stack([p['wo'] for p in layers]).astype(jnp.bfloat16),
            w1=jnp.stack([p['w1'] for p in layers]).astype(jnp.bfloat16),
            w2=jnp.stack([p['w2'] for p in layers]).astype(jnp.bfloat16),
            vec=jnp.stack(vec_rows).astype(jnp.float32),
        )

    def __call__(self, tgt, src, memory_key_padding_mask=None,
                 tgt_key_padding_mask=None, src_pos=None, query_pos=None,
                 flow=None):
        # TODO(synk): reference points / spatial shapes / level-start indices /
        # masks / flow are consumed only by the injected MSDeformAttn layer
        # (undefined here); they are computed for API parity but the synthetic
        # dense cross-attention layer does not consume them.
        B, T, H, W, C = tgt.shape
        m = get_valid_ratio(jnp.ones((1, H, W), jnp.float32))       # (1, 2)

        tgt_spatial_shapes = [(H, W)] * T
        valid_ratios_tgt = jnp.tile(m, (T, 1))[None]                # (1, T, 2)
        tgt_reference_points = get_reference_points(tgt_spatial_shapes,
                                                    valid_ratios_tgt)

        Ts = src.shape[1]
        src_spatial_shapes = [(H, W)] * Ts
        valid_ratios_src = jnp.tile(m, (Ts, 1))[None]
        _ = get_reference_points(src_spatial_shapes, valid_ratios_src)

        N = T * H * W
        M = Ts * H * W
        output = tgt.reshape(B, N, C).astype(jnp.float32)
        src_flat = src.reshape(B, M, C).astype(jnp.float32)
        qpos_flat = (query_pos.reshape(B, N, C).astype(jnp.float32)
                     if query_pos is not None else jnp.zeros_like(output))
        spos_flat = (src_pos.reshape(B, M, C).astype(jnp.float32)
                     if src_pos is not None else jnp.zeros_like(src_flat))

        s = self.stacked
        # K/V projections hoisted out of the kernel: computed once per
        # (layer, batch), keys fed pre-transposed (C, M) so the kernel never
        # does an XLU transpose, cast bf16 to halve DMA bytes / VMEM.
        kt_all = jnp.einsum('bmc,lcd->lbdm', src_flat + spos_flat,
                            s['wk']).astype(jnp.bfloat16)           # (L, B, C, M)
        v_all = jnp.einsum('bmc,lcd->lbmd', src_flat,
                           s['wv']).astype(jnp.bfloat16)            # (L, B, M, C)

        tq = self.tq if (self.tq % 8 == 0 and N % self.tq == 0) else N

        if self.return_intermediate:
            intermediate = []
            intermediate_reference_points = []
            for l in range(self.num_layers):
                output = run_fused_decoder(
                    output, qpos_flat,
                    kt_all[l:l + 1], v_all[l:l + 1],
                    s['wq'][l:l + 1], s['wo'][l:l + 1],
                    s['w1'][l:l + 1], s['w2'][l:l + 1],
                    s['vec'][l:l + 1], tq)
                intermediate.append(output)
                intermediate_reference_points.append(tgt_reference_points)
            return (jnp.stack(intermediate),
                    jnp.stack(intermediate_reference_points))

        output = run_fused_decoder(output, qpos_flat, kt_all, v_all,
                                   s['wq'], s['wo'], s['w1'], s['w2'],
                                   s['vec'], tq)
        output = output.reshape(B, T, H, W, C)
        return output, tgt_reference_points


# ----------------------------------------------------------------------------
# Deterministic parameter init
# ----------------------------------------------------------------------------
def init_layer_params(key, C, Dff):
    ks = jax.random.split(key, 6)
    s = 0.05
    return dict(
        wq=jax.random.normal(ks[0], (C, C), jnp.float32) * s,
        wk=jax.random.normal(ks[1], (C, C), jnp.float32) * s,
        wv=jax.random.normal(ks[2], (C, C), jnp.float32) * s,
        wo=jax.random.normal(ks[3], (C, C), jnp.float32) * s,
        g1=jnp.ones((C,), jnp.float32),
        b1=jnp.zeros((C,), jnp.float32),
        w1=jax.random.normal(ks[4], (C, Dff), jnp.float32) * s,
        bf1=jnp.zeros((Dff,), jnp.float32),
        w2=jax.random.normal(ks[5], (Dff, C), jnp.float32) * s,
        bf2=jnp.zeros((C,), jnp.float32),
        g2=jnp.ones((C,), jnp.float32),
        b2=jnp.zeros((C,), jnp.float32),
    )


if __name__ == "__main__":
    key = jax.random.PRNGKey(0)
    k_tgt, k_src, k_qp, k_sp, k_params = jax.random.split(key, 5)

    # lane-/MXU-friendly C (multiple of 128); everything else kept small.
    B, T, H, W, C = 2, 2, 8, 8, 128
    Ts = 2
    Dff = 256
    num_layers = 2

    tgt = jax.random.normal(k_tgt, (B, T, H, W, C), jnp.float32)
    src = jax.random.normal(k_src, (B, Ts, H, W, C), jnp.float32)
    query_pos = jax.random.normal(k_qp, (B, T, H * W, C), jnp.float32)
    src_pos = jax.random.normal(k_sp, (B, Ts, H * W, C), jnp.float32)

    layer_keys = jax.random.split(k_params, num_layers)
    layers = [init_layer_params(layer_keys[i], C, Dff) for i in range(num_layers)]

    decoder = DeformableTransformerDecoderPallas(layers, num_layers,
                                                 return_intermediate=False,
                                                 tq=64)
    out, ref_pts = decoder(tgt, src, query_pos=query_pos, src_pos=src_pos)
    out = jax.block_until_ready(out)
    ref_pts = jax.block_until_ready(ref_pts)

    assert out.shape == (B, T, H, W, C), out.shape
    assert ref_pts.shape == (1, T * H * W, T, 2), ref_pts.shape
    assert bool(jnp.all(jnp.isfinite(out)))
    print("KERNEL_OK")
</pallas_src>

<mosaic_0001>
module attributes {stable_mosaic.version = 11 : i64} {
  func.func @fused_decoder_kernel(%arg0: i32, %arg1: i32, %arg2: i32, %arg3: memref<1x64x128xf32, #tpu.memory_space<vmem>>, %arg4: memref<1x64x128xf32, #tpu.memory_space<vmem>>, %arg5: memref<1x1x128x128xbf16, #tpu.memory_space<vmem>>, %arg6: memref<1x1x128x128xbf16, #tpu.memory_space<vmem>>, %arg7: memref<1x128x128xbf16, #tpu.memory_space<vmem>>, %arg8: memref<1x128x128xbf16, #tpu.memory_space<vmem>>, %arg9: memref<1x128x256xbf16, #tpu.memory_space<vmem>>, %arg10: memref<1x256x128xbf16, #tpu.memory_space<vmem>>, %arg11: memref<1x8x256xf32, #tpu.memory_space<vmem>>, %arg12: memref<1x64x128xf32, #tpu.memory_space<vmem>>) attributes {dimension_semantics = [#tpu.dimension_semantics<parallel>, #tpu.dimension_semantics<parallel>, #tpu.dimension_semantics<arbitrary>], iteration_bounds = array<i64: 2, 2, 2>, scalar_prefetch = 0 : i64, scratch_operands = 0 : i64, tpu.core_type = #tpu.core_type<tc>, window_params = [{transform_indices = @transform_0, window_bounds = array<i64: 1, 64, 128>}, {transform_indices = @transform_1, window_bounds = array<i64: 1, 64, 128>}, {transform_indices = @transform_2, window_bounds = array<i64: 1, 1, 128, 128>}, {transform_indices = @transform_3, window_bounds = array<i64: 1, 1, 128, 128>}, {transform_indices = @transform_4, window_bounds = array<i64: 1, 128, 128>}, {transform_indices = @transform_5, window_bounds = array<i64: 1, 128, 128>}, {transform_indices = @transform_6, window_bounds = array<i64: 1, 128, 256>}, {transform_indices = @transform_7, window_bounds = array<i64: 1, 256, 128>}, {transform_indices = @transform_8, window_bounds = array<i64: 1, 8, 256>}, {transform_indices = @transform_9, window_bounds = array<i64: 1, 64, 128>}]} {
    %c0_i32 = arith.constant 0 : i32
    %0 = arith.cmpi eq, %arg2, %c0_i32 : i32
    %1 = arith.extui %0 : i1 to i32
    %c0_i32_0 = arith.constant 0 : i32
    %2 = arith.cmpi ne, %1, %c0_i32_0 : i32
    scf.if %2 {
      %c0_50 = arith.constant 0 : index
      %c0_51 = arith.constant 0 : index
      %c0_52 = arith.constant 0 : index
      %105 = vector.load %arg3[%c0_50, %c0_51, %c0_52] : memref<1x64x128xf32, #tpu.memory_space<vmem>>, vector<1x64x128xf32>
      %106 = vector.shape_cast %105 : vector<1x64x128xf32> to vector<64x128xf32>
      %c0_53 = arith.constant 0 : index
      %c0_54 = arith.constant 0 : index
      %c0_55 = arith.constant 0 : index
      %107 = vector.load %arg12[%c0_53, %c0_54, %c0_55] : memref<1x64x128xf32, #tpu.memory_space<vmem>>, vector<1x64x128xf32>
      %108 = vector.shape_cast %107 : vector<1x64x128xf32> to vector<64x128xf32>
      %109 = vector.shape_cast %106 : vector<64x128xf32> to vector<1x64x128xf32>
      tpu.vector_store %arg12[%c0_53, %c0_54, %c0_55], %109 {strides = array<i32>} : memref<1x64x128xf32, #tpu.memory_space<vmem>>, vector<1x64x128xf32>,
    } else {
    }
    %c0 = arith.constant 0 : index
    %c0_1 = arith.constant 0 : index
    %c0_2 = arith.constant 0 : index
    %3 = vector.load %arg12[%c0, %c0_1, %c0_2] : memref<1x64x128xf32, #tpu.memory_space<vmem>>, vector<1x64x128xf32>
    %4 = vector.shape_cast %3 : vector<1x64x128xf32> to vector<64x128xf32>
    %c0_3 = arith.constant 0 : index
    %c0_4 = arith.constant 0 : index
    %c0_5 = arith.constant 0 : index
    %5 = vector.load %arg4[%c0_3, %c0_4, %c0_5] : memref<1x64x128xf32, #tpu.memory_space<vmem>>, vector<1x64x128xf32>
    %6 = vector.shape_cast %5 : vector<1x64x128xf32> to vector<64x128xf32>
    %c0_6 = arith.constant 0 : index
    %c0_7 = arith.constant 0 : index
    %c0_8 = arith.constant 0 : index
    %c0_9 = arith.constant 0 : index
    %7 = vector.load %arg5[%c0_6, %c0_7, %c0_8, %c0_9] : memref<1x1x128x128xbf16, #tpu.memory_space<vmem>>, vector<1x1x128x128xbf16>
    %8 = vector.shape_cast %7 : vector<1x1x128x128xbf16> to vector<128x128xbf16>
    %c0_10 = arith.constant 0 : index
    %c0_11 = arith.constant 0 : index
    %c0_12 = arith.constant 0 : index
    %c0_13 = arith.constant 0 : index
    %9 = vector.load %arg6[%c0_10, %c0_11, %c0_12, %c0_13] : memref<1x1x128x128xbf16, #tpu.memory_space<vmem>>, vector<1x1x128x128xbf16>
    %10 = vector.shape_cast %9 : vector<1x1x128x128xbf16> to vector<128x128xbf16>
    %c0_14 = arith.constant 0 : index
    %c0_15 = arith.constant 0 : index
    %c0_16 = arith.constant 0 : index
    %11 = vector.load %arg11[%c0_14, %c0_15, %c0_16] : memref<1x8x256xf32, #tpu.memory_space<vmem>>, vector<1x8x256xf32>
    %12 = vector.shape_cast %11 : vector<1x8x256xf32> to vector<8x256xf32>
    %13 = vector.extract_strided_slice %12 {offsets = [0, 0], sizes = [1, 128], strides = [1, 1]} : vector<8x256xf32> to vector<1x128xf32>
    %14 = vector.extract_strided_slice %12 {offsets = [1, 0], sizes = [1, 128], strides = [1, 1]} : vector<8x256xf32> to vector<1x128xf32>
    %15 = vector.extract_strided_slice %12 {offsets = [2, 0], sizes = [1, 128], strides = [1, 1]} : vector<8x256xf32> to vector<1x128xf32>
    %16 = vector.extract_strided_slice %12 {offsets = [3, 0], sizes = [1, 128], strides = [1, 1]} : vector<8x256xf32> to vector<1x128xf32>
    %17 = vector.extract_strided_slice %12 {offsets = [4, 0], sizes = [1, 128], strides = [1, 1]} : vector<8x256xf32> to vector<1x128xf32>
    %18 = vector.extract_strided_slice %12 {offsets = [5, 0], sizes = [1, 256], strides = [1, 1]} : vector<8x256xf32> to vector<1x256xf32>
    %19 = arith.addf %4, %6 : vector<64x128xf32>
    %20 = arith.truncf %19 : vector<64x128xf32> to vector<64x128xbf16>
    %c0_17 = arith.constant 0 : index
    %c0_18 = arith.constant 0 : index
    %c0_19 = arith.constant 0 : index
    %21 = vector.load %arg7[%c0_17, %c0_18, %c0_19] : memref<1x128x128xbf16, #tpu.memory_space<vmem>>, vector<1x128x128xbf16>
    %22 = vector.shape_cast %21 : vector<1x128x128xbf16> to vector<128x128xbf16>
    %cst = arith.constant dense<0.000000e+00> : vector<64x128xf32>
    %23 = tpu.matmul %20, %22, %cst {dimension_numbers = #tpu.dot_dimension_numbers<[1], [0], [0], [1], [0, 0, 1, 1], [], []>} : vector<64x128xbf16>, vector<128x128xbf16>, vector<64x128xf32> -> vector<64x128xf32>
    %24 = arith.truncf %23 : vector<64x128xf32> to vector<64x128xbf16>
    %cst_20 = arith.constant dense<0.000000e+00> : vector<64x128xf32>
    %25 = tpu.matmul %24, %8, %cst_20 {dimension_numbers = #tpu.dot_dimension_numbers<[1], [0], [0], [1], [0, 0, 1, 1], [], []>} : vector<64x128xbf16>, vector<128x128xbf16>, vector<64x128xf32> -> vector<64x128xf32>
    %cst_21 = arith.constant dense<0xFF800000> : vector<64xf32>
    %26 = vector.multi_reduction <maximumf>, %25, %cst_21 [1] : vector<64x128xf32> to vector<64xf32>
    %27 = vector.shape_cast %26 : vector<64xf32> to vector<64x1xf32>
    %28 = vector.broadcast %27 : vector<64x1xf32> to vector<64x128xf32>
    %29 = arith.subf %25, %28 : vector<64x128xf32>
    %30 = math.exp %29 : vector<64x128xf32>
    %cst_22 = arith.constant dense<0.000000e+00> : vector<64xf32>
    %31 = vector.multi_reduction <add>, %30, %cst_22 [1] : vector<64x128xf32> to vector<64xf32>
    %32 = vector.shape_cast %31 : vector<64xf32> to vector<64x1xf32>
    %33 = tpu.reciprocal %32 {approx = true} : vector<64x1xf32> -> vector<64x1xf32>
    %34 = vector.broadcast %33 : vector<64x1xf32> to vector<64x128xf32>
    %35 = arith.mulf %30, %34 : vector<64x128xf32>
    %36 = arith.truncf %35 : vector<64x128xf32> to vector<64x128xbf16>
    %cst_23 = arith.constant dense<0.000000e+00> : vector<64x128xf32>
    %37 = tpu.matmul %36, %10, %cst_23 {dimension_numbers = #tpu.dot_dimension_numbers<[1], [0], [0], [1], [0, 0, 1, 1], [], []>} : vector<64x128xbf16>, vector<128x128xbf16>, vector<64x128xf32> -> vector<64x128xf32>
    %38 = arith.truncf %37 : vector<64x128xf32> to vector<64x128xbf16>
    %c0_24 = arith.constant 0 : index
    %c0_25 = arith.constant 0 : index
    %c0_26 = arith.constant 0 : index
    %39 = vector.load %arg8[%c0_24, %c0_25, %c0_26] : memref<1x128x128xbf16, #tpu.memory_space<vmem>>, vector<1x128x128xbf16>
    %40 = vector.shape_cast %39 : vector<1x128x128xbf16> to vector<128x128xbf16>
    %cst_27 = arith.constant dense<0.000000e+00> : vector<64x128xf32>
    %41 = tpu.matmul %38, %40, %cst_27 {dimension_numbers = #tpu.dot_dimension_numbers<[1], [0], [0], [1], [0, 0, 1, 1], [], []>} : vector<64x128xbf16>, vector<128x128xbf16>, vector<64x128xf32> -> vector<64x128xf32>
    %42 = arith.addf %4, %41 : vector<64x128xf32>
    %cst_28 = arith.constant dense<0.000000e+00> : vector<64xf32>
    %43 = vector.multi_reduction <add>, %42, %cst_28 [1] : vector<64x128xf32> to vector<64xf32>
    %44 = vector.shape_cast %43 : vector<64xf32> to vector<64x1xf32>
    %cst_29 = arith.constant 1.280000e+02 : f32
    %45 = vector.broadcast %cst_29 : f32 to vector<64x1xf32>
    %46 = arith.divf %44, %45 : vector<64x1xf32>
    %47 = vector.broadcast %46 : vector<64x1xf32> to vector<64x128xf32>
    %48 = arith.subf %42, %47 : vector<64x128xf32>
    %49 = arith.mulf %48, %48 : vector<64x128xf32>
    %cst_30 = arith.constant dense<0.000000e+00> : vector<64xf32>
    %50 = vector.multi_reduction <add>, %49, %cst_30 [1] : vector<64x128xf32> to vector<64xf32>
    %51 = vector.shape_cast %50 : vector<64xf32> to vector<64x1xf32>
    %cst_31 = arith.constant 1.280000e+02 : f32
    %52 = vector.broadcast %cst_31 : f32 to vector<64x1xf32>
    %53 = arith.divf %51, %52 : vector<64x1xf32>
    %54 = vector.broadcast %46 : vector<64x1xf32> to vector<64x128xf32>
    %55 = arith.subf %42, %54 : vector<64x128xf32>
    %cst_32 = arith.constant 9.99999974E-6 : f32
    %56 = vector.broadcast %cst_32 : f32 to vector<64x1xf32>
    %57 = arith.addf %53, %56 : vector<64x1xf32>
    %58 = math.rsqrt %57 : vector<64x1xf32>
    %59 = vector.broadcast %58 : vector<64x1xf32> to vector<64x128xf32>
    %60 = arith.mulf %55, %59 : vector<64x128xf32>
    %61 = vector.broadcast %13 : vector<1x128xf32> to vector<64x128xf32>
    %62 = arith.mulf %60, %61 : vector<64x128xf32>
    %63 = vector.broadcast %14 : vector<1x128xf32> to vector<64x128xf32>
    %64 = arith.addf %62, %63 : vector<64x128xf32>
    %65 = arith.truncf %64 : vector<64x128xf32> to vector<64x128xbf16>
    %c0_33 = arith.constant 0 : index
    %c0_34 = arith.constant 0 : index
    %c0_35 = arith.constant 0 : index
    %66 = vector.load %arg9[%c0_33, %c0_34, %c0_35] : memref<1x128x256xbf16, #tpu.memory_space<vmem>>, vector<1x128x256xbf16>
    %67 = vector.shape_cast %66 : vector<1x128x256xbf16> to vector<128x256xbf16>
    %cst_36 = arith.constant dense<0.000000e+00> : vector<64x256xf32>
    %68 = tpu.matmul %65, %67, %cst_36 {dimension_numbers = #tpu.dot_dimension_numbers<[1], [0], [0], [1], [0, 0, 1, 1], [], []>} : vector<64x128xbf16>, vector<128x256xbf16>, vector<64x256xf32> -> vector<64x256xf32>
    %69 = vector.broadcast %18 : vector<1x256xf32> to vector<64x256xf32>
    %70 = arith.addf %68, %69 : vector<64x256xf32>
    %cst_37 = arith.constant 0.000000e+00 : f32
    %71 = vector.broadcast %cst_37 : f32 to vector<64x256xf32>
    %72 = arith.maximumf %70, %71 : vector<64x256xf32>
    %73 = arith.truncf %72 : vector<64x256xf32> to vector<64x256xbf16>
    %c0_38 = arith.constant 0 : index
    %c0_39 = arith.constant 0 : index
    %c0_40 = arith.constant 0 : index
    %74 = vector.load %arg10[%c0_38, %c0_39, %c0_40] : memref<1x256x128xbf16, #tpu.memory_space<vmem>>, vector<1x256x128xbf16>
    %75 = vector.shape_cast %74 : vector<1x256x128xbf16> to vector<256x128xbf16>
    %cst_41 = arith.constant dense<0.000000e+00> : vector<64x128xf32>
    %76 = tpu.matmul %73, %75, %cst_41 {dimension_numbers = #tpu.dot_dimension_numbers<[1], [0], [0], [1], [0, 0, 1, 1], [], []>} : vector<64x256xbf16>, vector<256x128xbf16>, vector<64x128xf32> -> vector<64x128xf32>
    %77 = vector.broadcast %17 : vector<1x128xf32> to vector<64x128xf32>
    %78 = arith.addf %76, %77 : vector<64x128xf32>
    %79 = arith.addf %64, %78 : vector<64x128xf32>
    %cst_42 = arith.constant dense<0.000000e+00> : vector<64xf32>
    %80 = vector.multi_reduction <add>, %79, %cst_42 [1] : vector<64x128xf32> to vector<64xf32>
    %81 = vector.shape_cast %80 : vector<64xf32> to vector<64x1xf32>
    %cst_43 = arith.constant 1.280000e+02 : f32
    %82 = vector.broadcast %cst_43 : f32 to vector<64x1xf32>
    %83 = arith.divf %81, %82 : vector<64x1xf32>
    %84 = vector.broadcast %83 : vector<64x1xf32> to vector<64x128xf32>
    %85 = arith.subf %79, %84 : vector<64x128xf32>
    %86 = arith.mulf %85, %85 : vector<64x128xf32>
    %cst_44 = arith.constant dense<0.000000e+00> : vector<64xf32>
    %87 = vector.multi_reduction <add>, %86, %cst_44 [1] : vector<64x128xf32> to vector<64xf32>
    %88 = vector.shape_cast %87 : vector<64xf32> to vector<64x1xf32>
    %cst_45 = arith.constant 1.280000e+02 : f32
    %89 = vector.broadcast %cst_45 : f32 to vector<64x1xf32>
    %90 = arith.divf %88, %89 : vector<64x1xf32>
    %91 = vector.broadcast %83 : vector<64x1xf32> to vector<64x128xf32>
    %92 = arith.subf %79, %91 : vector<64x128xf32>
    %cst_46 = arith.constant 9.99999974E-6 : f32
    %93 = vector.broadcast %cst_46 : f32 to vector<64x1xf32>
    %94 = arith.addf %90, %93 : vector<64x1xf32>
    %95 = math.rsqrt %94 : vector<64x1xf32>
    %96 = vector.broadcast %95 : vector<64x1xf32> to vector<64x128xf32>
    %97 = arith.mulf %92, %96 : vector<64x128xf32>
    %98 = vector.broadcast %15 : vector<1x128xf32> to vector<64x128xf32>
    %99 = arith.mulf %97, %98 : vector<64x128xf32>
    %100 = vector.broadcast %16 : vector<1x128xf32> to vector<64x128xf32>
    %101 = arith.addf %99, %100 : vector<64x128xf32>
    %c0_47 = arith.constant 0 : index
    %c0_48 = arith.constant 0 : index
    %c0_49 = arith.constant 0 : index
    %102 = vector.load %arg12[%c0_47, %c0_48, %c0_49] : memref<1x64x128xf32, #tpu.memory_space<vmem>>, vector<1x64x128xf32>
    %103 = vector.shape_cast %102 : vector<1x64x128xf32> to vector<64x128xf32>
    %104 = vector.shape_cast %101 : vector<64x128xf32> to vector<1x64x128xf32>
    tpu.vector_store %arg12[%c0_47, %c0_48, %c0_49], %104 {strides = array<i32>} : memref<1x64x128xf32, #tpu.memory_space<vmem>>, vector<1x64x128xf32>,
    return
  }
  func.func @transform_0(%arg0: i32, %arg1: i32, %arg2: i32) -> (i32, i32, i32) {
    %c0_i32 = arith.constant 0 : i32
    %c0_i32_0 = arith.constant 0 : i32
    return %arg0, %arg1, %c0_i32 : i32, i32, i32
  }
  func.func @transform_1(%arg0: i32, %arg1: i32, %arg2: i32) -> (i32, i32, i32) {
    %c0_i32 = arith.constant 0 : i32
    %c0_i32_0 = arith.constant 0 : i32
    return %arg0, %arg1, %c0_i32 : i32, i32, i32
  }
  func.func @transform_2(%arg0: i32, %arg1: i32, %arg2: i32) -> (i32, i32, i32, i32) {
    %c0_i32 = arith.constant 0 : i32
    %c0_i32_0 = arith.constant 0 : i32
    %c0_i32_1 = arith.constant 0 : i32
    return %arg2, %arg0, %c0_i32, %c0_i32_0 : i32, i32, i32, i32
  }
  func.func @transform_3(%arg0: i32, %arg1: i32, %arg2: i32) -> (i32, i32, i32, i32) {
    %c0_i32 = arith.constant 0 : i32
    %c0_i32_0 = arith.constant 0 : i32
    %c0_i32_1 = arith.constant 0 : i32
    return %arg2, %arg0, %c0_i32, %c0_i32_0 : i32, i32, i32, i32
  }
  func.func @transform_4(%arg0: i32, %arg1: i32, %arg2: i32) -> (i32, i32, i32) {
    %c0_i32 = arith.constant 0 : i32
    %c0_i32_0 = arith.constant 0 : i32
    %c0_i32_1 = arith.constant 0 : i32
    return %arg2, %c0_i32, %c0_i32_0 : i32, i32, i32
  }
  func.func @transform_5(%arg0: i32, %arg1: i32, %arg2: i32) -> (i32, i32, i32) {
    %c0_i32 = arith.constant 0 : i32
    %c0_i32_0 = arith.constant 0 : i32
    %c0_i32_1 = arith.constant 0 : i32
    return %arg2, %c0_i32, %c0_i32_0 : i32, i32, i32
  }
  func.func @transform_6(%arg0: i32, %arg1: i32, %arg2: i32) -> (i32, i32, i32) {
    %c0_i32 = arith.constant 0 : i32
    %c0_i32_0 = arith.constant 0 : i32
    %c0_i32_1 = arith.constant 0 : i32
    return %arg2, %c0_i32, %c0_i32_0 : i32, i32, i32
  }
  func.func @transform_7(%arg0: i32, %arg1: i32, %arg2: i32) -> (i32, i32, i32) {
    %c0_i32 = arith.constant 0 : i32
    %c0_i32_0 = arith.constant 0 : i32
    %c0_i32_1 = arith.constant 0 : i32
    return %arg2, %c0_i32, %c0_i32_0 : i32, i32, i32
  }
  func.func @transform_8(%arg0: i32, %arg1: i32, %arg2: i32) -> (i32, i32, i32) {
    %c0_i32 = arith.constant 0 : i32
    %c0_i32_0 = arith.constant 0 : i32
    %c0_i32_1 = arith.constant 0 : i32
    return %arg2, %c0_i32, %c0_i32_0 : i32, i32, i32
  }
  func.func @transform_9(%arg0: i32, %arg1: i32, %arg2: i32) -> (i32, i32, i32) {
    %c0_i32 = arith.constant 0 : i32
    %c0_i32_0 = arith.constant 0 : i32
    return %arg0, %arg1, %c0_i32 : i32, i32, i32
  }
}

</mosaic_0001>

<bundles_post_ra>
// kernel: tpu_custom_call.1
= control target key start
LH: loop header
LB: loop body
LE: loop exit
PB: predicated region body
PF: predicated region fallthrough
CT: control target
= control target key end

     0   :  { %s4283_s0 = inlined_call_operand.hbm [shape: f32[2,128,128], index: 0, kind: input, shape index: {}]   ;;  %s4284_s1 = inlined_call_operand.hbm [shape: f32[2,128,128], index: 1, kind: input, shape index: {}]   ;;  %s4285_s2 = inlined_call_operand.hbm [shape: bf16[2,2,128,128], index: 2, kind: input, shape index: {}]   ;;  %s4286_s3 = inlined_call_operand.hbm [shape: bf16[2,2,128,128], index: 3, kind: input, shape index: {}]   ;;  %s4287_s4 = inlined_call_operand.hbm [shape: bf16[2,128,128], index: 4, kind: input, shape index: {}]   ;;  %s4288_s5 = inlined_call_operand.hbm [shape: bf16[2,128,128], index: 5, kind: input, shape index: {}]   ;;  %s4289_s6 = inlined_call_operand.hbm [shape: bf16[2,128,256], index: 6, kind: input, shape index: {}]   ;;  %s4290_s7 = inlined_call_operand.hbm [shape: bf16[2,256,128], index: 7, kind: input, shape index: {}]   ;;  %s4291_s8 = inlined_call_operand.hbm [shape: f32[2,8,256], index: 8, kind: input, shape index: {}]   ;;  %s4292_s9 = inlined_call_operand.hbm [shape: f32[2,128,128], index: 9, kind: output, shape index: {}]  }
   0x1   :  { %4343 = sst [smem:[#allocation55_spill]] %s4283_s0 }
   0x2   :  { %4344 = sst [smem:[#allocation56_spill]] %s4284_s1 }
   0x3   :  { %4345 = sst [smem:[#allocation57_spill]] %s4285_s2 }
   0x4   :  { %4346 = sst [smem:[#allocation58_spill]] %s4286_s3 }
   0x5   :  { %4347 = sst [smem:[#allocation59_spill]] %s4287_s4 }
   0x6   :  { %4348 = sst [smem:[#allocation60_spill]] %s4288_s5 }
   0x7   :  { %4349 = sst [smem:[#allocation61_spill]] %s4289_s6 }
   0x8   :  { %4350 = sst [smem:[#allocation62_spill]] %s4290_s7 }
   0x9   :  { %4351 = sst [smem:[#allocation63_spill]] %s4291_s8 }
   0xa   :  { %4352 = sst [smem:[#allocation64_spill]] %s4292_s9 }
   0xb   :  { %14 = vsyncpa [#allocation3], 0 }
   0xc   :  { %16 = vsyncpa [#allocation3 + $0x1], 0 }
   0xd   :  { %17 = vsyncpa [#allocation6], 0 }
   0xe   :  { %19 = vsyncpa [#allocation6 + $0x1], 0 }
   0xf   :  { %20 = vsyncpa [#allocation9], 0 }
  0x10   :  { %22 = vsyncpa [#allocation9 + $0x1], 0 }
  0x11   :  { %23 = vsyncpa [#allocation12], 0 }
  0x12   :  { %25 = vsyncpa [#allocation12 + $0x1], 0 }
  0x13   :  { %26 = vsyncpa [#allocation15], 0 }
  0x14   :  { %28 = vsyncpa [#allocation15 + $0x1], 0 }
  0x15   :  { %29 = vsyncpa [#allocation4], 0 }
  0x16   :  { %31 = vsyncpa [#allocation4 + $0x1], 0  ;;  %s3428_s30 = smov 0   ;;  %s3430_s10 = smov 0  }
  0x17   :  { %s3432_s11 = smov 0   ;;  %s3434_s12 = smov 0  }
  0x18   :  { %s3436_s13 = smov 0   ;;  %s3438_s14 = smov 0  }
  0x19   :  { %s3440_s15 = smov 0   ;;  %s3442_s16 = smov 0  }
  0x1a   :  { %s3444_s17 = smov 0   ;;  %s3446_s18 = smov 0  }
  0x1b   :  { %s3448_s19 = smov 0   ;;  %s3450_s20 = smov 0  }
  0x1c   :  { %s3452_s21 = smov 0   ;;  %s3454_s22 = smov 0  }
  0x1d   :  { %s3456_s23 = smov 0   ;;  %s3458_s24 = smov 0  }
  0x1e LB: > { %4353 = sst [smem:[#allocation26_spill]] %s3303_s10  ;;  %s3509_s25 = sadd.s32 4294967295, %s3359_s24   ;;  %s3359_s24 = sphi %s3458_s24, %s37_s24   ;;  %s3355_s23 = sphi %s3456_s23, %s4461_s23   ;;  %s3351_s22 = sphi %s3454_s22, %s4460_s22   ;;  %s3347_s21 = sphi %s3452_s21, %s4465_s21   ;;  %s3343_s20 = sphi %s3450_s20, %s4458_s20   ;;  %s3339_s19 = sphi %s3448_s19, %s4457_s19   ;;  %s3335_s18 = sphi %s3446_s18, %s4464_s18   ;;  %s3331_s17 = sphi %s3444_s17, %s4456_s17   ;;  %s3327_s16 = sphi %s3442_s16, %s4455_s16   ;;  %s3323_s15 = sphi %s3440_s15, %s4463_s15   ;;  %s3319_s14 = sphi %s3438_s14, %s4453_s14   ;;  %s3315_s13 = sphi %s3436_s13, %s4452_s13   ;;  %s3311_s12 = sphi %s3434_s12, %s4451_s12   ;;  %s3307_s11 = sphi %s3432_s11, %s4450_s11   ;;  %s3303_s10 = sphi %s3430_s10, %s4449_s10   ;;  %s3299_s30 = sphi %s3428_s30, %s4448_s30  }
  0x1f   : > { %4354 = sst [smem:[#allocation27_spill]] %s3307_s11  ;;  %s2293_s26 = sadd.s32 4294967294, %s3359_s24  }
  0x20   : > { %4355 = sst [smem:[#allocation28_spill]] %s3315_s13  ;;  %s49_s27 = sadd.s32 1, %s3347_s21 }
  0x21   : > { %4356 = sst [smem:[#allocation29_spill]] %s3319_s14  ;;  %s52_s28 = sadd.s32 1, %s3351_s22 }
  0x22   : > { %4357 = sst [smem:[#allocation30_spill]] %s3323_s15  ;;  %p50_p0 = scmp.ge.s32.totalorder %s49_s27, 2 }
  0x23   : > { %4358 = sst [smem:[#allocation31_spill]] %s3327_s16  ;;  %s56_s29 = sadd.s32 1, %s3355_s23 }
  0x24   : > { %4359 = sst [smem:[#allocation32_spill]] %s3331_s17  ;;  %s65_s9 = sadd.s32 1, %s3331_s17 }
  0x25   : > { %4360 = sst [smem:[#allocation33_spill]] %s3335_s18  ;;  %p72_p1 = scmp.ne.s32.totalorder %s3331_s17, %s3327_s16 }
  0x26   : > { %4361 = sst [smem:[#allocation34_spill]] %s3339_s19  ;;  %s4467_s27 = smov (%p50_p0, %s49_s27), 0 }
  0x27   : > { %4362 = sst [smem:[#allocation35_spill]] %s3343_s20  ;;  %s4469_s28 = smov (!%p50_p0, %s52_s28), %s3351_s22 }
  0x28   : > { %4363 = sst [smem:[#allocation36_spill]] %s3351_s22  ;;  %p4310_p2 = scmp.eq.s32.totalorder %s3359_s24, 0 }
  0x29   : > { %4364 = sst [smem:[#allocation37_spill]] %s3355_s23  ;;  %p78_p3 = scmp.ne.s32.totalorder %s3327_s16, %s3323_s15 }
  0x2a   : > { %4365 = sst [smem:[#allocation38_spill]] %s3359_s24  ;;  %p54_p4 = scmp.ge.s32.totalorder %s4469_s28, 2 }
  0x2b   : > { %4366 = sst [smem:[#allocation39_spill]] %s3509_s25  ;;  %p4309_p5 = scmp.eq.s32.totalorder %s3509_s25, 0 }
  0x2c   : > { %4367 = sst [smem:[#allocation40_spill]] %s4467_s27  ;;  %p3530_p6 = por %p4310_p2, %p72_p1 }
  0x2d   : > { %s3536_s19 = ssub.s32 %s3347_s21, %s4467_s27  ;;  %s4471_s28 = smov (%p54_p4, %s4469_s28), 0 }
  0x2e   : > { %4369 = sst [smem:[#allocation41_spill]] %s4471_s28  ;;  %s4473_s29 = smov (!%p54_p4, %s56_s29), %s3355_s23 }
  0x2f   : > { %s61_s18 = ssub.s32 %s3351_s22, %s4471_s28  ;;  %p3548_p7 = por %p4309_p5, %p78_p3 }
  0x30   : > { %p58_p8 = scmp.ge.s32.totalorder %s4473_s29, 2  ;;  %p318_p10 = scmp.eq.s32.totalorder %s3509_s25, 7 }
  0x31   : > { %s4370_s8 = scalar_select %p3548_p7, 1, 0 }
  0x32   : > { %p324_p11 = scmp.eq.s32.totalorder %s2293_s26, 7  ;;  %s4475_s29 = smov (%p58_p8, %s4473_s29), 0 }
  0x33   : > { %4371 = sst [smem:[#allocation42_spill]] %s4370_s8  ;;  %p3559_p12 = por %p318_p10, %p72_p1 }
  0x34   : > { %4372 = sst [smem:[#allocation43_spill]] %s4475_s29  ;;  %p3566_p13 = por %p324_p11, %p78_p3 }
  0x35   : > { %s4373_s28 = scalar_select %p3559_p12, 1, 0 }
  0x36   : > { %s4375_s27 = scalar_select %p3566_p13, 1, 0 }
  0x37   : > { %4374 = sst [smem:[#allocation44_spill]] %s4373_s28  ;;  %s60_s8 = ssub.s32 %s3355_s23, %s4475_s29 }
  0x38   : > { %4376 = sst [smem:[#allocation45_spill]] %s4375_s27  ;;  %s62_s0 = sor.u32 %s61_s18, %s60_s8 }
  0x39   : > { %s118_s7 = sor.u32 %s3536_s19, %s60_s8  ;;  %p63_p0 = scmp.eq.s32.totalorder %s62_s0, 0 }
  0x3a   : > { %p3573_p4 = scmp.eq.s32.totalorder %s118_s7, 0  ;;  %p4308_p8 = scmp.lt.s32.totalorder %s3359_s24, 8 }
  0x3b   : > { %s4302_s6 = sand.u32 1, %s3331_s17   ;;  %s2297_s28 = sshll.u32 %s3351_s22, 3 }
  0x3c   : > { %s3580_s5 = scalar_select %p63_p0, %s3331_s17, %s65_s9  }
  0x3d   : > { %s3584_s15 = sshll.u32 %s4302_s6, 6  ;;  %s4305_s16 = sshll.u32 %s3355_s23, 4 }
  0x3e   : > { %4378 = sst [smem:[#allocation46_spill]] %s3580_s5  ;;  %p3592_p1 = pnand %p4308_p8, %p3530_p6 }
  0x3f   : > { %s3598_s0 = sadd.s32 %s4305_s16, %s2297_s28  ;;  %s3602_s9 = sand.u32 1, %s3359_s24  }
  0x40   : > { %s4317_s7 = sshll.u32 %s3598_s0, 7  ;;  %s4380_s1 = sld [smem:[#allocation56_spill]] }
  0x41   : > { %s371_s29 = scalar_lea.vmem [#allocation5], %s3584_s15  ;;  %p2327_p3 = scmp.ge.s32.totalorder %s3359_s24, 1 }
  0x42   : > { %s380_s22 = sshll.u32 %s371_s29, 4  ;;  %s4312_s5 = scalar_lea.sflag [#allocation6], %s3602_s9  ;;  %s381_s22 = int_to_ptr.vmem [resolvable:$true] %s380_s22 }
  0x43   : > { %p4311_p6 = pneg %p3592_p1  ;;  %s2936_s28 = scalar_lea.vmem %s381_s22, 1024 }
  0x44   : > { %p2937_p10 = scmp.ne.s32.totalorder %s381_s22, %s2936_s28  ;;  %s3361_s16 = smov [#allocation5]  }
  0x45   : > { %s2941_s27 = sshll.u32 %s3361_s16, 4  ;;  %s2942_s27 = int_to_ptr.vmem [resolvable:$false] %s2941_s27 }
  0x46   : > { %s379_s20 = scalar_lea.hbm %s4380_s1, %s4317_s7  ;;  %p2939_p11 = pnand %p2937_p10, %p4311_p6 }
  0x47   : > { %s2943_s17 = scalar_lea.vmem %s2942_s27, 2048  ;;  %p2944_p9 = scmp.lt.s32.totalorder %s381_s22, %s2942_s27 }
  0x48   : > { %p2940_p0 = pneg %p2939_p11  ;;  %p2945_p8 = scmp.lt.s32.totalorder %s2943_s17, %s2936_s28 }
  0x4a   : > { %p2946_p5 = por %p2945_p8, %p2944_p9 }
  0x4c   : > { %p2947_p2 = pnand %p2946_p5, %p2940_p0 }
  0x4e   : > { %2950 = shalt.err (!%p2947_p2)
}
  0x4f   : > { %s4313_s6 = smov 128   ;;  %s4315_s16 = smov 8  }
  0x50   : > { %2624 = dma.hbm_to_vmem [thread:$0]  (!%p3592_p1), %s379_s20, 1024, %s381_s22, %s4312_s5, %s4313_s6, %s4313_s6, %s4315_s16  }
  0x51   : > { %p537_p2 = scmp.lt.s32.totalorder %s3359_s24, 9  ;;  %s121_s27 = sadd.s32 1, %s3319_s14 }
  0x52   : > { %p128_p9 = scmp.ne.s32.totalorder %s3319_s14, %s3315_s13  ;;  %p4384_p8 = scmp.eq.s32.totalorder %s3359_s24, 0 }
  0x53   : > { %p3627_p5 = pnand %p2327_p3, %p537_p2  ;;  %p134_p11 = scmp.ne.s32.totalorder %s3315_s13, %s3311_s12 }
  0x54   : > { %s3637_s29 = scalar_select %p3573_p4, %s3319_s14, %s121_s27  }
  0x55   : > { %s4381_s17 = scalar_select %p3627_p5, 1, 0 }
  0x56   : > { %4383 = sst [smem:[#allocation48_spill]] %s3637_s29  ;;  %p130_p10 = por %p128_p9, %p4384_p8 }
  0x57   : > { %4382 = sst [smem:[#allocation47_spill]] %s4381_s17  ;;  %s392_s18 = sand.u32 1, %s3319_s14  }
  0x58   : > { %s2306_s28 = sshll.u32 %s3347_s21, 5  ;;  %p4385_p0 = scmp.eq.s32.totalorder %s3509_s25, 0 }
  0x59   : > { %s2304_s20 = sshll.u32 %s392_s18, 6  ;;  %s4388_s5 = sshll.u32 %s3355_s23, 4 }
  0x5a   : > { %p3647_p6 = por %p134_p11, %p4385_p0  ;;  %s400_s6 = sadd.s32 %s2306_s28, %s4388_s5 }
  0x5b   : > { %s2307_s16 = sshll.u32 %s400_s6, 6  ;;  %s394_s7 = scalar_lea.vmem [#allocation7], %s2304_s20 }
  0x5c   : > { %s4386_s22 = scalar_select %p3647_p6, 1, 0 }
  0x5d   : > { %s403_s1 = sshll.u32 %s394_s7, 4  ;;  %s4389_s2 = sld [smem:[#allocation57_spill]]  ;;  %s3658_s1 = int_to_ptr.vmem [resolvable:$true] %s403_s1 }
  0x5e   : > { %4387 = sst [smem:[#allocation49_spill]] %s4386_s22  ;;  %p4391_p4 = scmp.lt.s32.totalorder %s3359_s24, 8 }
  0x5f   : > { %s4393_s3 = sld [smem:[#allocation58_spill]]  ;;  %s417_s6 = scalar_lea.vmem [#allocation8], %s2304_s20 }
  0x60   : > { %p3662_p3 = pnand %p4391_p4, %p130_p10  ;;  %s426_s7 = sshll.u32 %s417_s6, 4  ;;  %s427_s7 = int_to_ptr.vmem [resolvable:$true] %s426_s7 }
  0x61   : > { %s4322_s18 = scalar_lea.sflag [#allocation9], %s3602_s9  ;;  %s2964_s28 = scalar_lea.vmem %s427_s7, 1024 }
  0x62   : > { %p4321_p2 = pneg %p3662_p3  ;;  %p2965_p9 = scmp.ne.s32.totalorder %s427_s7, %s2964_s28 }
  0x63   : > { %s3656_s29 = scalar_lea.hbm %s4389_s2, %s2307_s16  ;;  %s3364_s26 = smov [#allocation8]  }
  0x64   : > { %4390 = sst [smem:[#allocation50_spill]] %s3656_s29  ;;  %p2967_p8 = pnand %p2965_p9, %p4321_p2 }
  0x65   : > { %s425_s5 = scalar_lea.hbm %s4393_s3, %s2307_s16  ;;  %s2969_s27 = sshll.u32 %s3364_s26, 4  ;;  %s2970_s27 = int_to_ptr.vmem [resolvable:$false] %s2969_s27 }
  0x66   : > { %p2968_p10 = pneg %p2967_p8  ;;  %s2971_s2 = scalar_lea.vmem %s2970_s27, 2048 }
  0x67   : > { %p2972_p11 = scmp.lt.s32.totalorder %s427_s7, %s2970_s27  ;;  %p2973_p0 = scmp.lt.s32.totalorder %s2971_s2, %s2964_s28 }
  0x69   : > { %p2974_p4 = por %p2973_p0, %p2972_p11 }
  0x6b   : > { %p2975_p13 = pnand %p2974_p4, %p2968_p10 }
  0x6d   : > { %2978 = shalt.err (!%p2975_p13)
}
  0x6e   : > { %s4323_s14 = smov 64   ;;  %s4325_s16 = smov 4  }
  0x6f   : > { %2630 = dma.hbm_to_vmem [thread:$0]  (!%p3662_p3), %s425_s5, 1024, %s427_s7, %s4322_s18, %s4323_s14, %s4323_s14, %s4325_s16  }
  0x70   : > { %s175_s2 = sadd.s32 1, %s3307_s11  ;;  %p4394_p13 = scmp.eq.s32.totalorder %s3536_s19, 0 }
  0x71   : > { %p182_p9 = scmp.ne.s32.totalorder %s3307_s11, %s3303_s10  ;;  %p188_p8 = scmp.ne.s32.totalorder %s3303_s10, %s3299_s30 }
  0x72   : > { %s3686_s22 = scalar_select %p4394_p13, %s3307_s11, %s175_s2  }
  0x73   : > { %s3693_s20 = sand.u32 1, %s3307_s11   ;;  %s2409_s6 = sshll.u32 %s3347_s21, 10 }
  0x74   : > { %4395 = sst [smem:[#allocation51_spill]] %s3686_s22  ;;  %p4396_p10 = scmp.eq.s32.totalorder %s3359_s24, 0 }
  0x75   : > { %p4397_p0 = scmp.eq.s32.totalorder %s3509_s25, 0  ;;  %s2312_s5 = sshll.u32 %s3693_s20, 6 }
  0x76   : > { %p184_p11 = por %p182_p9, %p4396_p10  ;;  %s4400_s4 = sld [smem:[#allocation59_spill]] }
  0x77   : > { %p3700_p4 = por %p188_p8, %p4397_p0  ;;  %p4402_p13 = scmp.lt.s32.totalorder %s3359_s24, 8 }
  0x78   : > { %s440_s27 = scalar_lea.vmem [#allocation10], %s2312_s5  ;;  %s4405_s16 = sld [smem:[#allocation60_spill]] }
  0x79   : > { %s4398_s28 = scalar_select %p3700_p4, 1, 0 }
  0x7a   : > { %p3712_p2 = pnand %p4402_p13, %p184_p11  ;;  %s447_s2 = sshll.u32 %s440_s27, 4  ;;  %s3716_s2 = int_to_ptr.vmem [resolvable:$true] %s447_s2 }
  0x7b   : > { %4399 = sst [smem:[#allocation52_spill]] %s4398_s28  ;;  %s461_s23 = scalar_lea.vmem [#allocation11], %s2312_s5 }
  0x7c   : > { %s3708_s26 = scalar_lea.hbm %s4400_s4, %s2409_s6  ;;  %4404 = sst [smem:[#allocation54_spill]] %s3716_s2 }
  0x7d   : > { %4401 = sst [smem:[#allocation53_spill]] %s3708_s26  ;;  %s468_s22 = sshll.u32 %s461_s23, 4  ;;  %s469_s22 = int_to_ptr.vmem [resolvable:$true] %s468_s22 }
  0x7e   : > { %s467_s3 = scalar_lea.hbm %s4405_s16, %s2409_s6  ;;  %s2318_s11 = sshll.u32 %s3693_s20, 7 }
  0x7f   : > { %s4340_s7 = scalar_lea.sflag [#allocation12], %s3602_s9  ;;  %p3725_p9 = pneg %p3712_p2 }
  0x80   : > { %s2992_s4 = scalar_lea.vmem %s469_s22, 1024  ;;  %s3367_s27 = smov [#allocation11]  }
  0x81   : > { %p2993_p8 = scmp.ne.s32.totalorder %s469_s22, %s2992_s4  ;;  %s2997_s24 = sshll.u32 %s3367_s27, 4  ;;  %s2998_s24 = int_to_ptr.vmem [resolvable:$false] %s2997_s24 }
  0x82   : > { %s2999_s18 = scalar_lea.vmem %s2998_s24, 2048  ;;  %p3000_p0 = scmp.lt.s32.totalorder %s469_s22, %s2998_s24 }
  0x83   : > { %p2995_p10 = pnand %p2993_p8, %p3725_p9  ;;  %p3001_p13 = scmp.lt.s32.totalorder %s2999_s18, %s2992_s4 }
  0x85   : > { %p2996_p11 = pneg %p2995_p10  ;;  %p3002_p12 = por %p3001_p13, %p3000_p0 }
  0x87   : > { %p3003_p4 = pnand %p3002_p12, %p2996_p11 }
  0x89   : > { %3006 = shalt.err (!%p3003_p4)
}
  0x8a   : > { %s4407_s23 = smov 4   ;;  %s4408_s14 = smov 64  }
  0x8b   : > { %2636 = dma.hbm_to_vmem [thread:$0]  (!%p3712_p2), %s467_s3, 1024, %s469_s22, %s4340_s7, %s4408_s14, %s4408_s14, %s4407_s23  }
  0x8c   : > { %s2411_s16 = sshll.u32 %s3347_s21, 11  ;;  %s482_s6 = scalar_lea.vmem [#allocation13], %s2318_s11 }
  0x8d   : > { %s489_s5 = sshll.u32 %s482_s6, 4  ;;  %s4409_s4 = sld [smem:[#allocation61_spill]]  ;;  %s3744_s5 = int_to_ptr.vmem [resolvable:$true] %s489_s5 }
  0x8e   : > { %s4410_s13 = sld [smem:[#allocation62_spill]]  ;;  %s503_s17 = scalar_lea.vmem [#allocation14], %s2318_s11 }
  0x8f   : > { %s510_s26 = sshll.u32 %s503_s17, 4  ;;  %s500_s2 = scalar_lea.sflag [#allocation15], %s3602_s9  ;;  %s511_s26 = int_to_ptr.vmem [resolvable:$true] %s510_s26 }
  0x90   : > { %s3020_s29 = scalar_lea.vmem %s511_s26, 2048  ;;  %s3368_s3 = smov [#allocation14]  }
  0x91   : > { %p3021_p12 = scmp.ne.s32.totalorder %s511_s26, %s3020_s29  ;;  %s3025_s22 = sshll.u32 %s3368_s3, 4  ;;  %s3026_s22 = int_to_ptr.vmem [resolvable:$false] %s3025_s22 }
  0x92   : > { %s3027_s6 = scalar_lea.vmem %s3026_s22, 4096  ;;  %p3028_p10 = scmp.lt.s32.totalorder %s511_s26, %s3026_s22 }
  0x93   : > { %s3742_s18 = scalar_lea.hbm %s4409_s4, %s2411_s16  ;;  %p3023_p4 = pnand %p3021_p12, %p3725_p9 }
  0x94   : > { %s509_s25 = scalar_lea.hbm %s4410_s13, %s2411_s16  ;;  %p3029_p11 = scmp.lt.s32.totalorder %s3027_s6, %s3020_s29 }
  0x95   : > { %p3024_p8 = pneg %p3023_p4 }
  0x96   : > { %p3030_p0 = por %p3029_p11, %p3028_p10 }
  0x98   : > { %p3031_p13 = pnand %p3030_p0, %p3024_p8 }
  0x9a   : > { %3034 = shalt.err (!%p3031_p13)
}
  0x9b   : > { %s4411_s10 = sld [smem:[#allocation32_spill]]  ;;  %s4412_s11 = sshll.u32 %s3598_s0, 7 }
  0x9c   : > { %2642 = dma.hbm_to_vmem [thread:$0]  (!%p3712_p2), %s509_s25, 2048, %s511_s26, %s500_s2, %s4408_s14, %s4408_s14, %s4407_s23  }
  0x9d   : > { %s4413_s29 = sld [smem:[#allocation55_spill]]  ;;  %s348_s16 = scalar_lea.vmem [#allocation2], %s3584_s15 }
  0x9e   : > { %s357_s27 = sshll.u32 %s348_s16, 4  ;;  %s2324_s24 = sshll.u32 %s3693_s20, 4  ;;  %s358_s27 = int_to_ptr.vmem [resolvable:$true] %s357_s27 }
  0x9f   : > { %s3048_s22 = scalar_lea.vmem %s358_s27, 1024  ;;  %p4415_p4 = pneg %p3592_p1 }
  0xa0   : > { %p3049_p12 = scmp.ne.s32.totalorder %s358_s27, %s3048_s22  ;;  %s3369_s6 = smov [#allocation2]  }
  0xa1   : > { %s4414_s4 = sand.u32 1, %s4411_s10   ;;  %s3053_s7 = sshll.u32 %s3369_s6, 4  ;;  %s3054_s7 = int_to_ptr.vmem [resolvable:$false] %s3053_s7 }
  0xa2   : > { %s345_s3 = scalar_lea.sflag [#allocation3], %s4414_s4  ;;  %p3051_p8 = pnand %p3049_p12, %p4415_p4 }
  0xa3   : > { %s356_s28 = scalar_lea.hbm %s4413_s29, %s4412_s11  ;;  %s3055_s25 = scalar_lea.vmem %s3054_s7, 2048 }
  0xa4   : > { %p3052_p10 = pneg %p3051_p8  ;;  %p3056_p11 = scmp.lt.s32.totalorder %s358_s27, %s3054_s7 }
  0xa5   : > { %p3057_p0 = scmp.lt.s32.totalorder %s3055_s25, %s3048_s22 }
  0xa7   : > { %p3058_p13 = por %p3057_p0, %p3056_p11 }
  0xa9   : > { %p3059_p6 = pnand %p3058_p13, %p3052_p10 }
  0xab   : > { %3062 = shalt.err (!%p3059_p6)
}
  0xac   : > { %s4416_s15 = smov 8   ;;  %s4417_s0 = smov 128  }
  0xad   : > { %2621 = dma.hbm_to_vmem [thread:$0]  (!%p3592_p1), %s356_s28, 1024, %s358_s27, %s345_s3, %s4417_s0, %s4417_s0, %s4416_s15  }
  0xae   : > { %s3076_s26 = scalar_lea.vmem %s3658_s1, 1024  ;;  %p4418_p4 = pneg %p3662_p3 }
  0xaf   : > { %p3077_p12 = scmp.ne.s32.totalorder %s3658_s1, %s3076_s26  ;;  %s3370_s7 = smov [#allocation7]  }
  0xb0   : > { %s3081_s10 = sshll.u32 %s3370_s7, 4  ;;  %s3082_s10 = int_to_ptr.vmem [resolvable:$false] %s3081_s10 }
  0xb1   : > { %p3079_p8 = pnand %p3077_p12, %p4418_p4  ;;  %s3083_s11 = scalar_lea.vmem %s3082_s10, 2048 }
  0xb2   : > { %p3084_p6 = scmp.lt.s32.totalorder %s3658_s1, %s3082_s10  ;;  %p3085_p10 = scmp.lt.s32.totalorder %s3083_s11, %s3076_s26 }
  0xb3   : > { %p3080_p7 = pneg %p3079_p8 }
  0xb4   : > { %p3086_p11 = por %p3085_p10, %p3084_p6 }
  0xb6   : > { %p3087_p0 = pnand %p3086_p11, %p3080_p7 }
  0xb8   : > { %3090 = shalt.err (!%p3087_p0)
}
  0xb9   : > { %s4419_s8 = scalar_lea.sflag [#allocation6], %s3602_s9  ;;  %s4420_s13 = sld [smem:[#allocation50_spill]] }
  0xba   : > { %s4421_s17 = sld [smem:[#allocation54_spill]]  ;;  %s3371_s28 = smov [#allocation10]  }
  0xbb   : > { %s3109_s16 = sshll.u32 %s3371_s28, 4  ;;  %s3110_s16 = int_to_ptr.vmem [resolvable:$false] %s3109_s16 }
  0xbc   : > { %s3111_s12 = scalar_lea.vmem %s3110_s16, 2048 }
  0xbf   : > { %2627 = dma.hbm_to_vmem [thread:$0]  (!%p3662_p3), %s4420_s13, 1024, %s3658_s1, %s4419_s8, %s4408_s14, %s4408_s14, %s4407_s23  }
  0xc0   : > { %s3104_s29 = scalar_lea.vmem %s4421_s17, 1024  ;;  %p3112_p12 = scmp.lt.s32.totalorder %s4421_s17, %s3110_s16 }
  0xc1   : > { %p3105_p1 = scmp.ne.s32.totalorder %s4421_s17, %s3104_s29  ;;  %p3113_p4 = scmp.lt.s32.totalorder %s3111_s12, %s3104_s29 }
  0xc3   : > { %p3107_p13 = pnand %p3105_p1, %p3725_p9  ;;  %p3114_p8 = por %p3113_p4, %p3112_p12 }
  0xc5   : > { %p3108_p7 = pneg %p3107_p13 }
  0xc7   : > { %p3115_p6 = pnand %p3114_p8, %p3108_p7 }
  0xc9   : > { %3118 = shalt.err (!%p3115_p6)
}
  0xca   : > { %s4422_s1 = scalar_lea.sflag [#allocation9], %s3602_s9  ;;  %s4423_s27 = sld [smem:[#allocation53_spill]] }
  0xcb   : > { %s3132_s4 = scalar_lea.vmem %s3744_s5, 2048  ;;  %s3372_s3 = smov [#allocation13]  }
  0xcc   : > { %p3133_p3 = scmp.ne.s32.totalorder %s3744_s5, %s3132_s4  ;;  %s3137_s22 = sshll.u32 %s3372_s3, 4  ;;  %s3138_s22 = int_to_ptr.vmem [resolvable:$false] %s3137_s22 }
  0xcd   : > { %s3139_s6 = scalar_lea.vmem %s3138_s22, 4096  ;;  %p3140_p0 = scmp.lt.s32.totalorder %s3744_s5, %s3138_s22 }
  0xce   : > { %p3135_p10 = pnand %p3133_p3, %p3725_p9  ;;  %p3141_p1 = scmp.lt.s32.totalorder %s3139_s6, %s3132_s4 }
  0xd0   : > { %2633 = dma.hbm_to_vmem [thread:$0]  (!%p3712_p2), %s4423_s27, 1024, %s4421_s17, %s4422_s1, %s4408_s14, %s4408_s14, %s4407_s23  }
  0xd1   : > { %p3136_p11 = pneg %p3135_p10  ;;  %p3142_p13 = por %p3141_p1, %p3140_p0 }
  0xd3   : > { %p3143_p7 = pnand %p3142_p13, %p3136_p11 }
  0xd5   : > { %3146 = shalt.err (!%p3143_p7)
}
  0xd6   : > { %s4424_s23 = scalar_lea.sflag [#allocation12], %s3602_s9  ;;  %s2413_s14 = sshll.u32 %s3347_s21, 8 }
  0xd7   : > { %2639 = dma.hbm_to_vmem [thread:$0]  (!%p3712_p2), %s3742_s18, 2048, %s3744_s5, %s4424_s23, %s4417_s0, %s4417_s0, %s4416_s15  }
  0xd8   : > { %s524_s25 = scalar_lea.vmem [#allocation16], %s2324_s24  ;;  %s4425_s11 = sld [smem:[#allocation63_spill]] }
  0xd9   : > { %s532_s26 = sshll.u32 %s524_s25, 4  ;;  %s3373_s17 = smov [#allocation16]   ;;  %s533_s26 = int_to_ptr.vmem [resolvable:$true] %s532_s26 }
  0xda   : > { %s3160_s13 = scalar_lea.vmem %s533_s26, 256  ;;  %s3165_s29 = sshll.u32 %s3373_s17, 4  ;;  %s3166_s29 = int_to_ptr.vmem [resolvable:$false] %s3165_s29 }
  0xdb   : > { %p3161_p12 = scmp.ne.s32.totalorder %s533_s26, %s3160_s13  ;;  %s3167_s28 = scalar_lea.vmem %s3166_s29, 512 }
  0xdc   : > { %p3168_p6 = scmp.lt.s32.totalorder %s533_s26, %s3166_s29  ;;  %p3169_p3 = scmp.lt.s32.totalorder %s3167_s28, %s3160_s13 }
  0xdd   : > { %p3163_p4 = pnand %p3161_p12, %p3725_p9 }
  0xde   : > { %s530_s8 = scalar_lea.hbm %s4425_s11, %s2413_s14  ;;  %p3170_p10 = por %p3169_p3, %p3168_p6 }
  0xdf   : > { %p3164_p8 = pneg %p3163_p4 }
  0xe1   : > { %p3171_p11 = pnand %p3170_p10, %p3164_p8 }
  0xe3   : > { %3174 = shalt.err (!%p3171_p11)
}
  0xe4   : > { %2645 = dma.hbm_to_vmem [thread:$0]  (!%p3712_p2), %s530_s8, 256, %s533_s26, %s500_s2  }
  0xe5   : > { %541 = sbr.rel (%p3627_p5) target bundleno = 2511 (0x9cf), region = 56  ;;  %s4427_s19 = sld [smem:[#allocation31_spill]] (!%p3627_p5) }
  0xe6   : > { %s4428_s5 = sld [smem:[#allocation42_spill]] (!%p3627_p5) }
  0xeb   : > { %s3834_s18 = sand.u32 1, %s4427_s19  }
  0xec   : > { %s3837_s24 = sshll.u32 %s3834_s18, 6  ;;  %s544_s15 = scalar_lea.sflag [#allocation3], %s3834_s18 }
  0xed   : > { %s3841_s0 = scalar_lea.vmem [#allocation2], %s3837_s24  ;;  %p4429_p9 = scmp.ne.s32.totalorder %s4428_s5, 0 }
  0xef   : > { %3266 = dma.done.wait (%p4429_p9), %s544_s15, 1024  }
  0xf0   : > { %3268 = vsyncadd (%p4429_p9), %s544_s15, 4294966272  ;;  %s4430_s9 = sld [smem:[#allocation39_spill]]  ;;  %s3849_s16 = scalar_lea.vmem [#allocation5], %s3837_s24 }
  0xf6   : > { %s552_s30 = sand.u32 1, %s4430_s9  }
  0xf7   : > { %s553_s2 = scalar_lea.sflag [#allocation6], %s552_s30 }
  0xf8   : > { %3270 = dma.done.wait (%p4429_p9), %s553_s2, 1024  }
  0xf9   : > { %3272 = vsyncadd (%p4429_p9), %s553_s2, 4294966272  ;;  %s4431_s12 = sld [smem:[#allocation28_spill]] }
  0xfa   : > { %s4432_s1 = sld [smem:[#allocation49_spill]] }
  0xff   : > { %s563_s27 = sand.u32 1, %s4431_s12  }
 0x100   : > { %s2330_s4 = sshll.u32 %s563_s27, 6  ;;  %p4433_p5 = scmp.ne.s32.totalorder %s4432_s1, 0 }
 0x101   : > { %s3856_s3 = scalar_lea.vmem [#allocation7], %s2330_s4 }
 0x102   : > { %3274 = dma.done.wait (%p4433_p5), %s553_s2, 1024  }
 0x103   : > { %3276 = vsyncadd (%p4433_p5), %s553_s2, 4294966272  ;;  %s571_s22 = scalar_lea.sflag [#allocation9], %s552_s30  ;;  %s3862_s6 = scalar_lea.vmem [#allocation8], %s2330_s4 }
 0x104   : > { %3278 = dma.done.wait (%p4433_p5), %s571_s22, 1024  }
 0x105   : > { %3280 = vsyncadd (%p4433_p5), %s571_s22, 4294966272  ;;  %s4434_s23 = sld [smem:[#allocation26_spill]] }
 0x106   : > { %s4435_s14 = sld [smem:[#allocation52_spill]] }
 0x10b   : > { %s581_s25 = sand.u32 1, %s4434_s23  }
 0x10c   : > { %s2332_s26 = sshll.u32 %s581_s25, 6  ;;  %p4436_p2 = scmp.ne.s32.totalorder %s4435_s14, 0 }
 0x10d   : > { %s3869_s7 = scalar_lea.vmem [#allocation10], %s2332_s26 }
 0x10e   : > { %3282 = dma.done.wait (%p4436_p2), %s571_s22, 1024  }
 0x10f   : > { %3284 = vsyncadd (%p4436_p2), %s571_s22, 4294966272  ;;  %s589_s10 = scalar_lea.sflag [#allocation12], %s552_s30  ;;  %s3875_s11 = scalar_lea.vmem [#allocation11], %s2332_s26 }
 0x110   : > { %3286 = dma.done.wait (%p4436_p2), %s589_s10, 3072  }
 0x111   : > { %3288 = vsyncadd (%p4436_p2), %s589_s10, 4294964224  ;;  %s2334_s8 = sshll.u32 %s581_s25, 7  ;;  %s607_s17 = scalar_lea.sflag [#allocation15], %s552_s30 }
 0x112   : > { %s3881_s13 = scalar_lea.vmem [#allocation13], %s2334_s8  ;;  %s3883_s29 = scalar_lea.vmem [#allocation14], %s2334_s8 }
 0x113   : > { %3290 = dma.done.wait (%p4436_p2), %s607_s17, 2304  }
 0x114   : > { %3292 = vsyncadd (%p4436_p2), %s607_s17, 4294964992  ;;  %s2336_s28 = sshll.u32 %s581_s25, 4  ;;  %s3892_s19 = scalar_lea.vmem [#allocation17], %s3837_s24 }
 0x115   : > { %s3889_s20 = scalar_lea.vmem [#allocation16], %s2336_s28  ;;  %s4437_s5 = sld [smem:[#allocation33_spill]] }
 0x11b   : > { %p2338_p0 = scmp.ne.s32.totalorder %s4437_s5, 0 }
 0x11d   : > { %701 = sbr.rel (%p2338_p0) target bundleno = 295 (0x127), region = 96 }
 0x122   : > { %v702_v0 = vld [vmem:[%s3841_s0] sm:$0xff]  ;;  %v703_v1 = vld [vmem:[%s3841_s0 + $0x8] sm:$0xff]  ;;  %v704_v2 = vld [vmem:[%s3841_s0 + $0x10] sm:$0xff] }
 0x123   : > { %710 = vst [vmem:[%s3892_s19] sm:$0xff] %v702_v0  ;;  %711 = vst [vmem:[%s3892_s19 + $0x8] sm:$0xff] %v703_v1  ;;  %v705_v3 = vld [vmem:[%s3841_s0 + $0x18] sm:$0xff]  ;;  %v706_v4 = vld [vmem:[%s3841_s0 + $0x20] sm:$0xff] }
 0x124   : > { %712 = vst [vmem:[%s3892_s19 + $0x10] sm:$0xff] %v704_v2  ;;  %v707_v5 = vld [vmem:[%s3841_s0 + $0x28] sm:$0xff]  ;;  %713 = vst [vmem:[%s3892_s19 + $0x18] sm:$0xff] %v705_v3  ;;  %v708_v6 = vld [vmem:[%s3841_s0 + $0x30] sm:$0xff] }
 0x125   : > { %714 = vst [vmem:[%s3892_s19 + $0x20] sm:$0xff] %v706_v4  ;;  %715 = vst [vmem:[%s3892_s19 + $0x28] sm:$0xff] %v707_v5  ;;  %v709_v7 = vld [vmem:[%s3841_s0 + $0x38] sm:$0xff] }
 0x126   : > { %716 = vst [vmem:[%s3892_s19 + $0x30] sm:$0xff] %v708_v6  ;;  %717 = vst [vmem:[%s3892_s19 + $0x38] sm:$0xff] %v709_v7 }
 0x127 PF: > { %v2787_v8 = vld [vmem:[%s3869_s7 + $0x38] sm:$0xff]   ;;  %v2788_v9 = vld [vmem:[%s3869_s7 + $0x30] sm:$0xff]   ;;  %v2789_v10 = vld [vmem:[%s3869_s7 + $0x28] sm:$0xff]   ;;  %s4438_s24 = sld [smem:[#allocation34_spill]]  ;;  %s2015_s12 = sshll.u32 %s3892_s19, 4  ;;  %s4199_s12 = int_to_ptr.vmem [resolvable:$true] %s2015_s12 }
 0x128   : > { %2502 = vmatprep.subr.bf16.mxu0 %v2787_v8  ;;  %v2790_v11 = vld [vmem:[%s3869_s7 + $0x20] sm:$0xff]   ;;  %v727_v15 = vld [vmem:[%s3849_s16 + $0x8] sm:$0xff]  ;;  %v2791_v18 = vld [vmem:[%s3869_s7 + $0x18] sm:$0xff]   ;;  %s4439_s15 = sld [smem:[#allocation35_spill]]  ;;  %s2000_s22 = scalar_lea.sflag [#allocation4], %s3834_s18 }
 0x129   : > { %2503 = vmatpush3.bf16.msra.mxu0 %v2787_v8  ;;  %v726_v14 = vld [vmem:[%s3849_s16] sm:$0xff]  ;;  %v2795_v20 = vld [vmem:[%s3856_s3 + $0x38] sm:$0xff]   ;;  %v2796_v21 = vld [vmem:[%s3856_s3 + $0x30] sm:$0xff]   ;;  %s4440_s2 = sld [smem:[#allocation44_spill]]  ;;  %s3375_s23 = smov [#allocation17]  }
 0x12a   : > { %2504 = vmatprep.subr.bf16.mxu0 %v2788_v9  ;;  %v3916_v12 = vld [vmem:[%s3892_s19] sm:$0xff]  ;;  %v3919_v13 = vld [vmem:[%s3892_s19 + $0x8] sm:$0xff]  ;;  %v2792_v22 = vld [vmem:[%s3869_s7 + $0x10] sm:$0xff]   ;;  %2526 = vmatprep.subr.bf16.mxu1 %v2795_v20  ;;  %s4441_s4 = sld [smem:[#allocation64_spill]]  ;;  %s3179_s14 = sshll.u32 %s3375_s23, 4  ;;  %s3180_s14 = int_to_ptr.vmem [resolvable:$false] %s3179_s14 }
 0x12b   : > { %v768_v16 = vadd.f32 %v726_v14, %v3916_v12  ;;  %v769_v17 = vadd.f32 %v727_v15, %v3919_v13  ;;  %2527 = vmatpush3.bf16.msra.mxu1 %v2795_v20  ;;  %v2797_v23 = vld [vmem:[%s3856_s3 + $0x28] sm:$0xff]   ;;  %v2798_v25 = vld [vmem:[%s3856_s3 + $0x20] sm:$0xff]   ;;  %v3933_v26 = vld [vmem:[%s3892_s19 + $0x10] sm:$0xff]  ;;  %s3181_s25 = scalar_lea.vmem %s3180_s14, 2048  ;;  %p3182_p4 = scmp.lt.s32.totalorder %s4199_s12, %s3180_s14 }
 0x12c   : > { %2528 = vmatprep.subr.bf16.mxu1 %v2796_v21  ;;  %v2793_v24 = vld [vmem:[%s3869_s7 + $0x8] sm:$0xff]   ;;  %v3936_v27 = vld [vmem:[%s3892_s19 + $0x18] sm:$0xff]  ;;  %v728_v28 = vld [vmem:[%s3849_s16 + $0x10] sm:$0xff] }
 0x12d   : > { %2505 = vmatpush3.bf16.msra.mxu0 %v2788_v9  ;;  %v776_v19 = vpack.c.bf16 %v769_v17, %v768_v16  ;;  %v729_v29 = vld [vmem:[%s3849_s16 + $0x18] sm:$0xff]  ;;  %v2794_v30 = vld [vmem:[%s3869_s7] sm:$0xff]   ;;  %v3945_v32 = vld [vmem:[%s3892_s19 + $0x28] sm:$0xff]  ;;  %v770_v36 = vadd.f32 %v728_v28, %v3933_v26  ;;  %s2404_s0 = sshll.u32 %s4438_s24, 3 }
 0x12e   : > { %2506 = vmatprep.subr.bf16.mxu0 %v2789_v10  ;;  %v3942_v31 = vld [vmem:[%s3892_s19 + $0x20] sm:$0xff]  ;;  %v731_v34 = vld [vmem:[%s3849_s16 + $0x28] sm:$0xff]  ;;  %v2799_v35 = vld [vmem:[%s3856_s3 + $0x18] sm:$0xff]   ;;  %v771_v37 = vadd.f32 %v729_v29, %v3936_v27  ;;  %s2405_s9 = sshll.u32 %s4439_s15, 4 }
 0x12f   : > { %2518 = vmatprep.mubr.bf16.mxu0 %v776_v19  ;;  %2529 = vmatpush3.bf16.msra.mxu1 %v2796_v21  ;;  %v730_v33 = vld [vmem:[%s3849_s16 + $0x20] sm:$0xff]  ;;  %v773_v39 = vadd.f32 %v731_v34, %v3945_v32  ;;  %v2800_v40 = vld [vmem:[%s3856_s3 + $0x10] sm:$0xff]   ;;  %v3959_v42 = vld [vmem:[%s3892_s19 + $0x38] sm:$0xff]  ;;  %s2012_s30 = sadd.s32 %s2405_s9, %s2404_s0  ;;  %p4442_p13 = scmp.ne.s32.totalorder %s4440_s2, 0 }
 0x130   : > { %2530 = vmatprep.subr.bf16.mxu1 %v2797_v23  ;;  %v772_v38 = vadd.f32 %v730_v33, %v3942_v31  ;;  %v3956_v41 = vld [vmem:[%s3892_s19 + $0x30] sm:$0xff]  ;;  %v733_v44 = vld [vmem:[%s3849_s16 + $0x38] sm:$0xff]  ;;  %v777_v45 = vpack.c.bf16 %v771_v37, %v770_v36  ;;  %v2801_v50 = vld [vmem:[%s3856_s3 + $0x8] sm:$0xff]  }
 0x131   : > { %2507 = vmatpush3.bf16.msra.mxu0 %v2789_v10  ;;  %v732_v43 = vld [vmem:[%s3849_s16 + $0x30] sm:$0xff]  ;;  %v775_v48 = vadd.f32 %v733_v44, %v3959_v42  ;;  %v2802_v51 = vld [vmem:[%s3856_s3] sm:$0xff]   ;;  %v2803_v8 = vld [vmem:[%s3862_s6 + $0x38] sm:$0xff]   ;;  %s2406_s16 = sshll.u32 %s2012_s30, 7 }
 0x132   : > { %2508 = vmatprep.subr.bf16.mxu0 %v2790_v11  ;;  %v778_v46 = vpack.c.bf16 %v773_v39, %v772_v38  ;;  %v774_v47 = vadd.f32 %v732_v43, %v3956_v41  ;;  %v2804_v9 = vld [vmem:[%s3862_s6 + $0x30] sm:$0xff]   ;;  %s4197_s3 = scalar_lea.hbm %s4441_s4, %s2406_s16 }
 0x133   : > { %2531 = vmatpush3.bf16.msra.mxu1 %v2797_v23 }
 0x134   : > { %2532 = vmatprep.subr.bf16.mxu1 %v2798_v25  ;;  %v779_v49 = vpack.c.bf16 %v775_v48, %v774_v47  ;;  %v2805_v47 = vld [vmem:[%s3862_s6 + $0x28] sm:$0xff]  }
 0x135   : > { %2509 = vmatpush3.bf16.msra.mxu0 %v2790_v11 }
 0x136   : > { %2510 = vmatprep.subr.bf16.mxu0 %v2791_v18 }
 0x137   : > { %2533 = vmatpush3.bf16.msra.mxu1 %v2798_v25 }
 0x138   : > { %2534 = vmatprep.subr.bf16.mxu1 %v2799_v35 }
 0x139   : > { %2511 = vmatpush3.bf16.msra.mxu0 %v2791_v18 }
 0x13a   : > { %2512 = vmatprep.subr.bf16.mxu0 %v2792_v22 }
 0x13b   : > { %2535 = vmatpush3.bf16.msra.mxu1 %v2799_v35 }
 0x13c   : > { %2536 = vmatprep.subr.bf16.mxu1 %v2800_v40 }
 0x13d   : > { %2513 = vmatpush3.bf16.msra.mxu0 %v2792_v22 }
 0x13e   : > { %2514 = vmatprep.subr.bf16.mxu0 %v2793_v24 }
 0x13f   : > { %2537 = vmatpush3.bf16.msra.mxu1 %v2800_v40 }
 0x140   : > { %2538 = vmatprep.subr.bf16.mxu1 %v2801_v50 }
 0x141   : > { %2515 = vmatpush3.bf16.msra.mxu0 %v2793_v24 }
 0x142   : > { %2516 = vmatprep.subr.bf16.mxu0 %v2794_v30 }
 0x143   : > { %2539 = vmatpush3.bf16.msra.mxu1 %v2801_v50 }
 0x144   : > { %2540 = vmatprep.subr.bf16.mxu1 %v2802_v51 }
 0x145   : > { %2517 = vmatpush3.bf16.msra.mxu0 %v2794_v30 }
 0x146   : > { %2550 = vmatprep.subr.bf16.mxu0 %v2803_v8 }
 0x147   : > { %2541 = vmatpush3.bf16.msra.mxu1 %v2802_v51  ;;  %v2806_v51 = vld [vmem:[%s3862_s6 + $0x20] sm:$0xff]  }
 0x148   : > { %2519 = vmatmul.mubr.bf16.vlgmr.msra.gmra.mxu0 %v777_v45 }
 0x149   : > { %2522 = vmatprep.mubr.bf16.mxu0 %v778_v46  ;;  %2551 = vmatpush3.bf16.msra.mxu0 %v2803_v8 }
 0x14a   : > { %2552 = vmatprep.subr.bf16.mxu0 %v2804_v9 }
 0x14d   : > { %2553 = vmatpush3.bf16.msra.mxu0 %v2804_v9 }
 0x14e   : > { %2554 = vmatprep.subr.bf16.mxu0 %v2805_v47 }
 0x150   : > { %2523 = vmatmul.mubr.bf16.gmra.mxu0 %v779_v49 }
 0x151   : > { %2555 = vmatpush3.bf16.msra.mxu0 %v2805_v47 }
 0x152   : > { %2556 = vmatprep.subr.bf16.mxu0 %v2806_v51 }
 0x155   : > { %2557 = vmatpush3.bf16.msra.mxu0 %v2806_v51 }
 0x208   : > { %v2520_v52 = vpop.f32.mrf.mxu0 }
 0x20a   : > { %v878_v53 = vpop.f32.mrf.mxu0 }
 0x20c   : > { %v2521_v54 = vpop.f32.mrf.mxu0 }
 0x20d   : > { %v910_v57 = vpack.c.bf16 %v2521_v54, %v2520_v52  ;;  %v2807_v52 = vld [vmem:[%s3862_s6 + $0x18] sm:$0xff]   ;;  %v2809_v54 = vld [vmem:[%s3862_s6 + $0x8] sm:$0xff]  }
 0x20e   : > { %v881_v55 = vpop.f32.mrf.mxu0  ;;  %2558 = vmatprep.subr.bf16.mxu0 %v2807_v52 }
 0x20f   : > { %v909_v56 = vpack.c.bf16 %v881_v55, %v878_v53  ;;  %2559 = vmatpush3.bf16.msra.mxu0 %v2807_v52  ;;  %v2808_v53 = vld [vmem:[%s3862_s6 + $0x10] sm:$0xff]   ;;  %v2810_v55 = vld [vmem:[%s3862_s6] sm:$0xff]   ;;  %s3175_s6 = scalar_lea.vmem %s4199_s12, 1024 }
 0x210   : > { %v2524_v58 = vpop.f32.mrf.mxu0  ;;  %2560 = vmatprep.subr.bf16.mxu0 %v2808_v53  ;;  %p3176_p1 = scmp.ne.s32.totalorder %s4199_s12, %s3175_s6  ;;  %p3183_p8 = scmp.lt.s32.totalorder %s3181_s25, %s3175_s6 }
 0x211   : > { %2542 = vmatprep.mubr.bf16.mxu1 %v909_v56  ;;  %v2811_v56 = vld [vmem:[%s3875_s11 + $0x38] sm:$0xff]  }
 0x212   : > { %v894_v59 = vpop.f32.mrf.mxu0  ;;  %2543 = vmatmul.mubr.bf16.vlgmr.msra.gmra.mxu1 %v910_v57  ;;  %v2812_v57 = vld [vmem:[%s3875_s11 + $0x30] sm:$0xff]   ;;  %2574 = vmatprep.subr.bf16.mxu1 %v2811_v56  ;;  %p3177_p7 = pnand %p3176_p1, %p4442_p13  ;;  %p3184_p6 = por %p3183_p8, %p3182_p4 }
 0x213   : > { %2561 = vmatpush3.bf16.msra.mxu0 %v2808_v53  ;;  %2575 = vmatpush3.bf16.msra.mxu1 %v2811_v56 }
 0x214   : > { %v2525_v60 = vpop.f32.mrf.mxu0  ;;  %2562 = vmatprep.subr.bf16.mxu0 %v2809_v54  ;;  %2576 = vmatprep.subr.bf16.mxu1 %v2812_v57  ;;  %p3178_p12 = pneg %p3177_p7 }
 0x215   : > { %v912_v61 = vpack.c.bf16 %v2525_v60, %v2524_v58  ;;  %v2813_v58 = vld [vmem:[%s3875_s11 + $0x28] sm:$0xff]   ;;  %v2815_v60 = vld [vmem:[%s3875_s11 + $0x18] sm:$0xff]  }
 0x216   : > { %v897_v62 = vpop.f32.mrf.mxu0  ;;  %p3185_p3 = pnand %p3184_p6, %p3178_p12 }
 0x217   : > { %v911_v63 = vpack.c.bf16 %v897_v62, %v894_v59  ;;  %2563 = vmatpush3.bf16.msra.mxu0 %v2809_v54  ;;  %2577 = vmatpush3.bf16.msra.mxu1 %v2812_v57  ;;  %v2814_v59 = vld [vmem:[%s3875_s11 + $0x20] sm:$0xff]  }
 0x218   : > { %2564 = vmatprep.subr.bf16.mxu0 %v2810_v55  ;;  %2578 = vmatprep.subr.bf16.mxu1 %v2813_v58 }
 0x219   : > { %2546 = vmatprep.mubr.bf16.mxu1 %v911_v63 }
 0x21a   : > { %2547 = vmatmul.mubr.bf16.gmra.mxu1 %v912_v61  ;;  %v2816_v61 = vld [vmem:[%s3875_s11 + $0x10] sm:$0xff]  }
 0x21b   : > { %2565 = vmatpush3.bf16.msra.mxu0 %v2810_v55  ;;  %2579 = vmatpush3.bf16.msra.mxu1 %v2813_v58 }
 0x21c   : > { %2580 = vmatprep.subr.bf16.mxu1 %v2814_v59 }
 0x21f   : > { %2581 = vmatpush3.bf16.msra.mxu1 %v2814_v59 }
 0x220   : > { %2582 = vmatprep.subr.bf16.mxu1 %v2815_v60 }
 0x223   : > { %2583 = vmatpush3.bf16.msra.mxu1 %v2815_v60 }
 0x224   : > { %2584 = vmatprep.subr.bf16.mxu1 %v2816_v61 }
 0x227   : > { %2585 = vmatpush3.bf16.msra.mxu1 %v2816_v61  ;;  %v2819_v61 = vld [vmem:[%s3881_s13 + $0x70] ss:$8 sps:$4 sm:$0xff]  }
 0x2d2   : > { %v2544_v0 = vpop.f32.mrf.mxu1 }
 0x2d3   : > { %1030 = vmax.xlane.f32.xlu1 %v2544_v0 }
 0x2d4   : > { %v995_v1 = vpop.f32.mrf.mxu1 }
 0x2d5   : > { %1026 = vmax.xlane.f32.xlu0 %v995_v1 }
 0x2d6   : > { %v2545_v2 = vpop.f32.mrf.mxu1 }
 0x2d7   : > { %1032 = vmax.xlane.f32.xlu1 %v2545_v2 }
 0x2d8   : > { %v998_v3 = vpop.f32.mrf.mxu1 }
 0x2d9   : > { %1028 = vmax.xlane.f32.xlu0 %v998_v3 }
 0x2da   : > { %v2548_v4 = vpop.f32.mrf.mxu1 }
 0x2dc   : > { %v1011_v5 = vpop.f32.mrf.mxu1 }
 0x2dd   : > { %1034 = vmax.xlane.f32.xlu0 %v1011_v5 }
 0x2de   : > { %v2549_v6 = vpop.f32.mrf.mxu1 }
 0x2e0   : > { %v1014_v7 = vpop.f32.mrf.mxu1 }
 0x2e1   : > { %1038 = vmax.xlane.f32.xlu0 %v2548_v4  ;;  %1036 = vmax.xlane.f32.xlu1 %v1014_v7 }
 0x2e5   : > { %1040 = vmax.xlane.f32.xlu1 %v2549_v6 }
 0x35c   : > { %v1031_v10 = vpop.xlane.xlu1 %1030 }
 0x35d   : > { %v1044_v11 = vsub.f32 %v2544_v0, %v1031_v10 }
 0x35e   : > { %v1027_v14 = vpop.xlane.xlu0 %1026 }
 0x35f   : > { %v1042_v15 = vsub.f32 %v995_v1, %v1027_v14  ;;  %v1054_v18 = vmul.f32 1.442695, %v1044_v11 }
 0x360   : > { %v1033_v16 = vpop.xlane.xlu1 %1032 }
 0x361   : > { %v1050_v17 = vmul.f32 1.442695, %v1042_v15  ;;  %v1045_v19 = vsub.f32 %v2545_v2, %v1033_v16 }
 0x362   : > { %v1029_v20 = vpop.xlane.xlu0 %1028 }
 0x363   : > { %2859 = vpow2.f32 %v1050_v17  ;;  %v1043_v21 = vsub.f32 %v998_v3, %v1029_v20  ;;  %v1056_v23 = vmul.f32 1.442695, %v1045_v19 }
 0x364   : > { %2861 = vpow2.f32 %v1054_v18 }
 0x365   : > { %v1052_v22 = vmul.f32 1.442695, %v1043_v21 }
 0x366   : > { %v1035_v24 = vpop.xlane.xlu0 %1034 }
 0x367   : > { %2863 = vpow2.f32 %v1052_v22  ;;  %v1046_v25 = vsub.f32 %v1011_v5, %v1035_v24 }
 0x368   : > { %2865 = vpow2.f32 %v1056_v23 }
 0x369   : > { %v1058_v28 = vmul.f32 1.442695, %v1046_v25 }
 0x36a   : > { %v1039_v29 = vpop.xlane.xlu0 %1038  ;;  %v1037_v30 = vpop.xlane.xlu1 %1036 }
 0x36b   : > { %2867 = vpow2.f32 %v1058_v28  ;;  %v1048_v33 = vsub.f32 %v2548_v4, %v1039_v29  ;;  %v1047_v34 = vsub.f32 %v1014_v7, %v1037_v30  ;;  %v2817_v30 = vld [vmem:[%s3875_s11 + $0x8] sm:$0xff]  }
 0x36c   : > { %2586 = vmatprep.subr.bf16.mxu1 %v2817_v30 }
 0x36d   : > { %v1062_v35 = vmul.f32 1.442695, %v1048_v33  ;;  %v1060_v36 = vmul.f32 1.442695, %v1047_v34  ;;  %2587 = vmatpush3.bf16.msra.mxu1 %v2817_v30  ;;  %v2818_v33 = vld [vmem:[%s3875_s11] sm:$0xff]  }
 0x36e   : > { %v1041_v37 = vpop.xlane.xlu1 %1040  ;;  %2588 = vmatprep.subr.bf16.mxu1 %v2818_v33 }
 0x36f   : > { %2869 = vpow2.f32 %v1062_v35  ;;  %v1049_v38 = vsub.f32 %v2549_v6, %v1041_v37 }
 0x370   : > { %v3969_v39 = vpop.eup %2859  ;;  %2871 = vpow2.f32 %v1060_v36 }
 0x371   : > { %v1064_v40 = vmul.f32 1.442695, %v1049_v38  ;;  %1066 = vadd.xlane.f32.xlu0 %v3969_v39  ;;  %v3972_v43 = vpop.eup %2861  ;;  %2589 = vmatpush3.bf16.msra.mxu1 %v2818_v33 }
 0x373   : > { %2873 = vpow2.f32 %v1064_v40 }
 0x374   : > { %v3974_v44 = vpop.eup %2863 }
 0x375   : > { %1070 = vadd.xlane.f32.xlu0 %v3972_v43  ;;  %1068 = vadd.xlane.f32.xlu1 %v3974_v44  ;;  %v3978_v45 = vpop.eup %2865 }
 0x378   : > { %v3980_v46 = vpop.eup %2867 }
 0x379   : > { %1074 = vadd.xlane.f32.xlu0 %v3980_v46  ;;  %1072 = vadd.xlane.f32.xlu1 %v3978_v45 }
 0x37c   : > { %v3985_v48 = vpop.eup %2869 }
 0x37d   : > { %v3987_v49 = vpop.eup %2871  ;;  %1078 = vadd.xlane.f32.xlu0 %v3985_v48 }
 0x37e   : > { %1076 = vadd.xlane.f32.xlu1 %v3987_v49 }
 0x380   : > { %v3991_v50 = vpop.eup %2873 }
 0x382   : > { %1080 = vadd.xlane.f32.xlu1 %v3991_v50 }
 0x3fa   : > { %v1067_v62 = vpop.xlane.xlu0 %1066 }
 0x3fb   : > { %2875 = vrcp.f32 %v1067_v62  ;;  %v2821_v62 = vld [vmem:[%s3881_s13 + $0x74] ss:$8 sps:$4 sm:$0xff]  }
 0x3fc   : > { %1577 = vmatprep.subr.bf16.mxu0 %v2821_v62 }
 0x3fe   : > { %v1071_v63 = vpop.xlane.xlu0 %1070  ;;  %v1069_v0 = vpop.xlane.xlu1 %1068 }
 0x3ff   : > { %2877 = vrcp.f32 %v1069_v0 }
 0x400   : > { %2879 = vrcp.f32 %v1071_v63 }
 0x402   : > { %v1075_v1 = vpop.xlane.xlu0 %1074  ;;  %v1073_v2 = vpop.xlane.xlu1 %1072 }
 0x403   : > { %2881 = vrcp.f32 %v1073_v2 }
 0x404   : > { %2883 = vrcp.f32 %v1075_v1 }
 0x406   : > { %v1079_v3 = vpop.xlane.xlu0 %1078 }
 0x407   : > { %v1077_v4 = vpop.xlane.xlu1 %1076 }
 0x408   : > { %2885 = vrcp.f32 %v1077_v4  ;;  %v2876_v5 = vpop.eup %2875 }
 0x409   : > { %2887 = vrcp.f32 %v1079_v3  ;;  %v1090_v8 = vmul.f32 %v2876_v5, %v3969_v39 }
 0x40b   : > { %v1081_v6 = vpop.xlane.xlu1 %1080 }
 0x40c   : > { %2889 = vrcp.f32 %v1081_v6  ;;  %v2878_v7 = vpop.eup %2877 }
 0x40d   : > { %v1091_v9 = vmul.f32 %v2878_v7, %v3974_v44  ;;  %v2880_v10 = vpop.eup %2879 }
 0x40e   : > { %v1092_v15 = vmul.f32 %v2880_v10, %v3972_v43 }
 0x40f   : > { %v1098_v11 = vpack.c.bf16 %v1091_v9, %v1090_v8 }
 0x410   : > { %v2882_v14 = vpop.eup %2881 }
 0x411   : > { %2566 = vmatprep.mubr.bf16.mxu0 %v1098_v11  ;;  %v1093_v16 = vmul.f32 %v2882_v14, %v3978_v45  ;;  %v2884_v17 = vpop.eup %2883 }
 0x412   : > { %v1094_v20 = vmul.f32 %v2884_v17, %v3980_v46 }
 0x413   : > { %v1099_v18 = vpack.c.bf16 %v1093_v16, %v1092_v15 }
 0x415   : > { %v2886_v19 = vpop.eup %2885  ;;  %2567 = vmatmul.mubr.bf16.vlgmr.msra.gmra.mxu0 %v1099_v18 }
 0x416   : > { %v1095_v21 = vmul.f32 %v2886_v19, %v3987_v49  ;;  %v2888_v22 = vpop.eup %2887  ;;  %1578 = vmatpush1.bf16.msra.mxu0 %v2819_v61 }
 0x417   : > { %v1096_v25 = vmul.f32 %v2888_v22, %v3985_v48 }
 0x418   : > { %v1100_v23 = vpack.c.bf16 %v1095_v21, %v1094_v20 }
 0x419   : > { %v2890_v24 = vpop.eup %2889 }
 0x41a   : > { %2570 = vmatprep.mubr.bf16.mxu0 %v1100_v23  ;;  %v1097_v28 = vmul.f32 %v2890_v24, %v3991_v50 }
 0x41c   : > { %v1101_v29 = vpack.c.bf16 %v1097_v28, %v1096_v25  ;;  %v2824_v28 = vld [vmem:[%s3881_s13 + $0x64] ss:$8 sps:$4 sm:$0xff]  }
 0x41d   : > { %1579 = vmatprep.subr.bf16.mxu0 %v2824_v28 }
 0x41e   : > { %2571 = vmatmul.mubr.bf16.gmra.mxu0 %v1101_v29  ;;  %v2822_v29 = vld [vmem:[%s3881_s13 + $0x60] ss:$8 sps:$4 sm:$0xff]  }
 0x41f   : > { %1580 = vmatpush1.bf16.msra.mxu0 %v2822_v29 }
 0x4d5   : > { %v2568_v34 = vpop.f32.mrf.mxu0 }
 0x4d7   : > { %v1184_v35 = vpop.f32.mrf.mxu0 }
 0x4d9   : > { %v2569_v36 = vpop.f32.mrf.mxu0 }
 0x4da   : > { %v1216_v39 = vpack.c.bf16 %v2569_v36, %v2568_v34  ;;  %v2827_v34 = vld [vmem:[%s3881_s13 + $0x54] ss:$8 sps:$4 sm:$0xff]   ;;  %v2830_v36 = vld [vmem:[%s3881_s13 + $0x44] ss:$8 sps:$4 sm:$0xff]  }
 0x4db   : > { %v1187_v37 = vpop.f32.mrf.mxu0  ;;  %1581 = vmatprep.subr.bf16.mxu0 %v2827_v34 }
 0x4dc   : > { %v1215_v38 = vpack.c.bf16 %v1187_v37, %v1184_v35  ;;  %v2825_v35 = vld [vmem:[%s3881_s13 + $0x50] ss:$8 sps:$4 sm:$0xff]   ;;  %v2828_v37 = vld [vmem:[%s3881_s13 + $0x40] ss:$8 sps:$4 sm:$0xff]  }
 0x4dd   : > { %1582 = vmatpush1.bf16.msra.mxu0 %v2825_v35 }
 0x4de   : > { %v2572_v40 = vpop.f32.mrf.mxu0  ;;  %2590 = vmatprep.mubr.bf16.mxu1 %v1215_v38  ;;  %1583 = vmatprep.subr.bf16.mxu0 %v2830_v36  ;;  %v2833_v38 = vld [vmem:[%s3881_s13 + $0x34] ss:$8 sps:$4 sm:$0xff]  }
 0x4df   : > { %2591 = vmatmul.mubr.bf16.vlgmr.msra.gmra.mxu1 %v1216_v39  ;;  %v2831_v39 = vld [vmem:[%s3881_s13 + $0x30] ss:$8 sps:$4 sm:$0xff]  }
 0x4e0   : > { %v1200_v43 = vpop.f32.mrf.mxu0 }
 0x4e1   : > { %1584 = vmatpush1.bf16.msra.mxu0 %v2828_v37 }
 0x4e2   : > { %v2573_v44 = vpop.f32.mrf.mxu0  ;;  %1585 = vmatprep.subr.bf16.mxu0 %v2833_v38 }
 0x4e3   : > { %v1218_v47 = vpack.c.bf16 %v2573_v44, %v2572_v40  ;;  %v2836_v40 = vld [vmem:[%s3881_s13 + $0x24] ss:$8 sps:$4 sm:$0xff]   ;;  %v2839_v44 = vld [vmem:[%s3881_s13 + $0x14] ss:$8 sps:$4 sm:$0xff]  }
 0x4e4   : > { %v1203_v45 = vpop.f32.mrf.mxu0 }
 0x4e5   : > { %v1217_v46 = vpack.c.bf16 %v1203_v45, %v1200_v43  ;;  %1586 = vmatpush1.bf16.msra.mxu0 %v2831_v39  ;;  %v2834_v43 = vld [vmem:[%s3881_s13 + $0x20] ss:$8 sps:$4 sm:$0xff]   ;;  %v2837_v45 = vld [vmem:[%s3881_s13 + $0x10] ss:$8 sps:$4 sm:$0xff]  }
 0x4e6   : > { %1587 = vmatprep.subr.bf16.mxu0 %v2836_v40 }
 0x4e7   : > { %2594 = vmatprep.mubr.bf16.mxu1 %v1217_v46  ;;  %v2842_v46 = vld [vmem:[%s3881_s13 + $0x4] ss:$8 sps:$4 sm:$0xff]  }
 0x4e8   : > { %2595 = vmatmul.mubr.bf16.gmra.mxu1 %v1218_v47  ;;  %v2840_v47 = vld [vmem:[%s3881_s13] ss:$8 sps:$4 sm:$0xff]  }
 0x4e9   : > { %1588 = vmatpush1.bf16.msra.mxu0 %v2834_v43 }
 0x4ea   : > { %1589 = vmatprep.subr.bf16.mxu0 %v2839_v44 }
 0x4ed   : > { %1590 = vmatpush1.bf16.msra.mxu0 %v2837_v45 }
 0x4ee   : > { %1591 = vmatprep.subr.bf16.mxu0 %v2842_v46 }
 0x4f1   : > { %1592 = vmatpush1.bf16.msra.mxu0 %v2840_v47 }
 0x59f   : > { %v2592_v48 = vpop.f32.mrf.mxu1 }
 0x5a0   : > { %v1350_v53 = vadd.f32 %v2592_v48, %v3933_v26  ;;  %v3374_v48 = vmov 0  }
 0x5a1   : > { %v1317_v49 = vpop.f32.mrf.mxu1  ;;  %1609 = vmatprep.mubr.bf16.mxu0 %v3374_v48 }
 0x5a2   : > { %v1348_v50 = vadd.f32 %v1317_v49, %v3916_v12  ;;  %v2843_v49 = vld [vmem:[%s3883_s29 + $0x78] sm:$0xff]  }
 0x5a3   : > { %v2593_v51 = vpop.f32.mrf.mxu1  ;;  %2462 = vmatprep.subr.bf16.mxu1 %v2843_v49 }
 0x5a4   : > { %1356 = vadd.xlane.f32.xlu0 %v1348_v50  ;;  %v1351_v57 = vadd.f32 %v2593_v51, %v3936_v27  ;;  %v2845_v51 = vld [vmem:[%s3883_s29 + $0x70] sm:$0xff]  }
 0x5a5   : > { %v1320_v52 = vpop.f32.mrf.mxu1 }
 0x5a6   : > { %v1349_v54 = vadd.f32 %v1320_v52, %v3919_v13  ;;  %v2846_v52 = vld [vmem:[%s3883_s29 + $0x30] sm:$0xff]  }
 0x5a8   : > { %v2596_v55 = vpop.f32.mrf.mxu1  ;;  %1360 = vadd.xlane.f32.xlu0 %v1350_v53  ;;  %1358 = vadd.xlane.f32.xlu1 %v1349_v54 }
 0x5a9   : > { %v1354_v60 = vadd.f32 %v2596_v55, %v3956_v41  ;;  %v2849_v55 = vld [vmem:[%s3883_s29 + $0x60] sm:$0xff]  }
 0x5aa   : > { %v1333_v56 = vpop.f32.mrf.mxu1 }
 0x5ab   : > { %v1352_v58 = vadd.f32 %v1333_v56, %v3942_v31  ;;  %v2850_v56 = vld [vmem:[%s3883_s29 + $0x20] sm:$0xff]  }
 0x5ac   : > { %v2597_v59 = vpop.f32.mrf.mxu1  ;;  %1362 = vadd.xlane.f32.xlu1 %v1351_v57 }
 0x5ad   : > { %1364 = vadd.xlane.f32.xlu0 %v1352_v58  ;;  %v1355_v13 = vadd.f32 %v2597_v59, %v3959_v42 }
 0x5ae   : > { %v1336_v12 = vpop.f32.mrf.mxu1 }
 0x5af   : > { %v1353_v26 = vadd.f32 %v1336_v12, %v3945_v32 }
 0x5b1   : > { %1368 = vadd.xlane.f32.xlu0 %v1354_v60  ;;  %1366 = vadd.xlane.f32.xlu1 %v1353_v26 }
 0x5b5   : > { %1370 = vadd.xlane.f32.xlu1 %v1355_v13 }
 0x62d   : > { %v1357_v27 = vpop.xlane.xlu0 %1356 }
 0x62e   : > { %v1373_v63 = vmul.f32 0.0078125, %v1357_v27 }
 0x630   : > { %v4025_v31 = vsub.f32 %v1348_v50, %v1373_v63  ;;  %v2844_v50 = vld [vmem:[%s3883_s29 + $0x38] sm:$0xff]  }
 0x631   : > { %v1361_v0 = vpop.xlane.xlu0 %1360  ;;  %v1359_v1 = vpop.xlane.xlu1 %1358  ;;  %2463 = vmatpush3.bf16.msra.mxu1 %v2844_v50 }
 0x632   : > { %v1375_v2 = vmul.f32 0.0078125, %v1361_v0  ;;  %v1374_v3 = vmul.f32 0.0078125, %v1359_v1  ;;  %v1389_v32 = vmul.f32 %v4025_v31, %v4025_v31  ;;  %2464 = vmatprep.subr.bf16.mxu1 %v2845_v51  ;;  %v1445_v1 = vlaneseq }
 0x634   : > { %v4029_v41 = vsub.f32 %v1350_v53, %v1375_v2  ;;  %v4031_v4 = vsub.f32 %v1349_v54, %v1374_v3  ;;  %1397 = vadd.xlane.f32.xlu0 %v1389_v32  ;;  %v2847_v53 = vld [vmem:[%s3883_s29 + $0x68] sm:$0xff]  }
 0x635   : > { %v1363_v5 = vpop.xlane.xlu1 %1362  ;;  %2465 = vmatpush3.bf16.msra.mxu1 %v2846_v52  ;;  %v2848_v54 = vld [vmem:[%s3883_s29 + $0x28] sm:$0xff]  }
 0x636   : > { %v1365_v42 = vpop.xlane.xlu0 %1364  ;;  %v1376_v7 = vmul.f32 0.0078125, %v1363_v5  ;;  %v1391_v8 = vmul.f32 %v4029_v41, %v4029_v41  ;;  %v1390_v9 = vmul.f32 %v4031_v4, %v4031_v4  ;;  %2466 = vmatprep.subr.bf16.mxu1 %v2847_v53 }
 0x637   : > { %v1377_v6 = vmul.f32 0.0078125, %v1365_v42 }
 0x638   : > { %v4039_v11 = vsub.f32 %v1351_v57, %v1376_v7  ;;  %1401 = vadd.xlane.f32.xlu0 %v1391_v8  ;;  %1399 = vadd.xlane.f32.xlu1 %v1390_v9  ;;  %v2851_v57 = vld [vmem:[%s3883_s29 + $0x58] sm:$0xff]  }
 0x639   : > { %v4037_v10 = vsub.f32 %v1352_v58, %v1377_v6  ;;  %2467 = vmatpush3.bf16.msra.mxu1 %v2848_v54  ;;  %v2852_v58 = vld [vmem:[%s3883_s29 + $0x18] sm:$0xff]   ;;  %v4082_v6 = vshrl.u32 %v1445_v1, 7 }
 0x63a   : > { %v1369_v14 = vpop.xlane.xlu0 %1368  ;;  %v1367_v15 = vpop.xlane.xlu1 %1366  ;;  %v1392_v19 = vmul.f32 %v4039_v11, %v4039_v11  ;;  %2468 = vmatprep.subr.bf16.mxu1 %v2849_v55  ;;  %v767_v1 = vld [vmem:[%s3889_s20 + $0x8] sm:$0xff] }
 0x63b   : > { %v1379_v16 = vmul.f32 0.0078125, %v1369_v14  ;;  %v1378_v17 = vmul.f32 0.0078125, %v1367_v15  ;;  %v1393_v18 = vmul.f32 %v4037_v10, %v4037_v10 }
 0x63c   : > { %1403 = vadd.xlane.f32.xlu1 %v1392_v19 }
 0x63d   : > { %v4045_v20 = vsub.f32 %v1354_v60, %v1379_v16  ;;  %v4047_v21 = vsub.f32 %v1353_v26, %v1378_v17  ;;  %1405 = vadd.xlane.f32.xlu0 %v1393_v18  ;;  %2469 = vmatpush3.bf16.msra.mxu1 %v2850_v56  ;;  %v1447_v16 = vsub.s32 0, %v4082_v6  ;;  %v4086_v17 = vld [vmem:[%s3889_s20] sm:$0xff] }
 0x63e   : > { %v1371_v22 = vpop.xlane.xlu1 %1370  ;;  %2470 = vmatprep.subr.bf16.mxu1 %v2851_v57 }
 0x63f   : > { %v1380_v23 = vmul.f32 0.0078125, %v1371_v22  ;;  %v1395_v24 = vmul.f32 %v4045_v20, %v4045_v20  ;;  %v1394_v25 = vmul.f32 %v4047_v21, %v4047_v21 }
 0x641   : > { %v4055_v30 = vsub.f32 %v1355_v13, %v1380_v23  ;;  %1409 = vadd.xlane.f32.xlu0 %v1395_v24  ;;  %1407 = vadd.xlane.f32.xlu1 %v1394_v25  ;;  %v1448_v24 = vrot.slane %v4086_v17, %v1447_v16  ;;  %v1459_v25 = vsub.s32 1, %v4082_v6 }
 0x642   : > { %2471 = vmatpush3.bf16.msra.mxu1 %v2852_v58 }
 0x643   : > { %v1396_v33 = vmul.f32 %v4055_v30, %v4055_v30  ;;  %v1460_v36 = vrot.slane %v4086_v17, %v1459_v25 }
 0x645   : > { %1411 = vadd.xlane.f32.xlu1 %v1396_v33 }
 0x6bd   : > { %v1398_v59 = vpop.xlane.xlu0 %1397 }
 0x6be   : > { %v1413_v12 = vmul.f32 0.0078125, %v1398_v59 }
 0x6c0   : > { %v1421_v60 = vadd.f32 1e-05, %v1413_v12 }
 0x6c1   : > { %v1402_v26 = vpop.xlane.xlu0 %1401  ;;  %v1400_v13 = vpop.xlane.xlu1 %1399 }
 0x6c2   : > { %2891 = vrsqrt.f32 %v1421_v60  ;;  %v1415_v61 = vmul.f32 0.0078125, %v1402_v26  ;;  %v1414_v62 = vmul.f32 0.0078125, %v1400_v13 }
 0x6c4   : > { %v1422_v27 = vadd.f32 1e-05, %v1414_v62  ;;  %v1423_v63 = vadd.f32 1e-05, %v1415_v61  ;;  %v2854_v61 = vld [vmem:[%s3883_s29 + $0x10] sm:$0xff]   ;;  %v2855_v62 = vld [vmem:[%s3883_s29 + $0x48] sm:$0xff]  }
 0x6c5   : > { %v1404_v0 = vpop.xlane.xlu1 %1403 }
 0x6c6   : > { %v1406_v2 = vpop.xlane.xlu0 %1405  ;;  %v1416_v3 = vmul.f32 0.0078125, %v1404_v0  ;;  %2893 = vrsqrt.f32 %v1422_v27  ;;  %v2856_v27 = vld [vmem:[%s3883_s29 + $0x8] sm:$0xff]   ;;  %v2858_v0 = vld [vmem:[%s3883_s29] sm:$0xff]  }
 0x6c7   : > { %2895 = vrsqrt.f32 %v1423_v63  ;;  %v1417_v42 = vmul.f32 0.0078125, %v1406_v2  ;;  %v2857_v63 = vld [vmem:[%s3883_s29 + $0x40] sm:$0xff]  }
 0x6c8   : > { %v1424_v32 = vadd.f32 1e-05, %v1416_v3 }
 0x6c9   : > { %v1425_v9 = vadd.f32 1e-05, %v1417_v42 }
 0x6ca   : > { %v1408_v5 = vpop.xlane.xlu1 %1407  ;;  %2897 = vrsqrt.f32 %v1424_v32  ;;  %v1410_v14 = vpop.xlane.xlu0 %1409 }
 0x6cb   : > { %v1418_v7 = vmul.f32 0.0078125, %v1408_v5  ;;  %v1419_v22 = vmul.f32 0.0078125, %v1410_v14 }
 0x6cd   : > { %v1426_v8 = vadd.f32 1e-05, %v1418_v7  ;;  %v1427_v33 = vadd.f32 1e-05, %v1419_v22 }
 0x6ce   : > { %v1412_v15 = vpop.xlane.xlu1 %1411 }
 0x6cf   : > { %v2892_v18 = vpop.eup %2891  ;;  %2899 = vrsqrt.f32 %v1426_v8  ;;  %v1420_v19 = vmul.f32 0.0078125, %v1412_v15 }
 0x6d0   : > { %v1437_v23 = vmul.f32 %v2892_v18, %v4025_v31  ;;  %2901 = vrsqrt.f32 %v1425_v9 }
 0x6d1   : > { %v1428_v28 = vadd.f32 1e-05, %v1420_v19 }
 0x6d2   : > { %v1449_v35 = vmul.f32 %v1448_v24, %v1437_v23 }
 0x6d3   : > { %v2894_v29 = vpop.eup %2893  ;;  %2903 = vrsqrt.f32 %v1428_v28 }
 0x6d4   : > { %v1438_v34 = vmul.f32 %v2894_v29, %v4031_v4  ;;  %v2896_v37 = vpop.eup %2895  ;;  %2905 = vrsqrt.f32 %v1427_v33  ;;  %v4093_v40 = vadd.f32 %v1460_v36, %v1449_v35 }
 0x6d5   : > { %v1439_v43 = vmul.f32 %v2896_v37, %v4029_v41 }
 0x6d6   : > { %v1450_v38 = vmul.f32 %v1448_v24, %v1438_v34 }
 0x6d7   : > { %v2898_v39 = vpop.eup %2897  ;;  %v1451_v47 = vmul.f32 %v1448_v24, %v1439_v43 }
 0x6d8   : > { %v4095_v31 = vadd.f32 %v1460_v36, %v1450_v38  ;;  %v1440_v44 = vmul.f32 %v2898_v39, %v4039_v11 }
 0x6d9   : > { %v4105_v52 = vadd.f32 %v1460_v36, %v1451_v47 }
 0x6da   : > { %v1469_v45 = vpack.c.bf16 %v4095_v31, %v4093_v40  ;;  %v1452_v4 = vmul.f32 %v1448_v24, %v1440_v44 }
 0x6dc   : > { %v2900_v46 = vpop.eup %2899  ;;  %1610 = vmatmul.mubr.bf16.vlgmr.msra.gmra.mxu0 %v1469_v45  ;;  %v4102_v50 = vadd.f32 %v1460_v36, %v1452_v4 }
 0x6dd   : > { %v2902_v49 = vpop.eup %2901  ;;  %1619 = vmatprep.mubr.bf16.mxu0 %v3374_v48  ;;  %v1442_v51 = vmul.f32 %v2900_v46, %v4047_v21 }
 0x6de   : > { %v1441_v41 = vmul.f32 %v2902_v49, %v4037_v10  ;;  %v1470_v11 = vpack.c.bf16 %v4102_v50, %v4105_v52 }
 0x6df   : > { %v1454_v53 = vmul.f32 %v1448_v24, %v1442_v51 }
 0x6e0   : > { %v2904_v54 = vpop.eup %2903  ;;  %v1453_v56 = vmul.f32 %v1448_v24, %v1441_v41 }
 0x6e1   : > { %v2906_v55 = vpop.eup %2905  ;;  %v4111_v57 = vadd.f32 %v1460_v36, %v1454_v53  ;;  %v1444_v21 = vmul.f32 %v2904_v54, %v4055_v30 }
 0x6e2   : > { %v4114_v58 = vadd.f32 %v1460_v36, %v1453_v56  ;;  %v1443_v10 = vmul.f32 %v2906_v55, %v4045_v20  ;;  %v2853_v20 = vld [vmem:[%s3883_s29 + $0x50] sm:$0xff]  }
 0x6e3   : > { %v1456_v12 = vmul.f32 %v1448_v24, %v1444_v21  ;;  %2472 = vmatprep.subr.bf16.mxu1 %v2853_v20 }
 0x6e4   : > { %1620 = vmatmul.mubr.bf16.gmra.mxu0 %v1470_v11  ;;  %v1471_v59 = vpack.c.bf16 %v4111_v57, %v4114_v58  ;;  %v1455_v60 = vmul.f32 %v1448_v24, %v1443_v10  ;;  %2473 = vmatpush3.bf16.msra.mxu1 %v2854_v61 }
 0x6e5   : > { %1629 = vmatprep.mubr.bf16.mxu0 %v3374_v48  ;;  %v4120_v26 = vadd.f32 %v1460_v36, %v1456_v12  ;;  %2474 = vmatprep.subr.bf16.mxu1 %v2855_v62 }
 0x6e6   : > { %v4122_v13 = vadd.f32 %v1460_v36, %v1455_v60 }
 0x6e8   : > { %v1472_v30 = vpack.c.bf16 %v4120_v26, %v4122_v13  ;;  %2475 = vmatpush3.bf16.msra.mxu1 %v2856_v27 }
 0x6e9   : > { %2476 = vmatprep.subr.bf16.mxu1 %v2857_v63 }
 0x6ec   : > { %1630 = vmatmul.mubr.bf16.gmra.mxu0 %v1471_v59  ;;  %2477 = vmatpush3.bf16.msra.mxu1 %v2858_v0 }
 0x6ed   : > { %1639 = vmatprep.mubr.bf16.mxu0 %v3374_v48  ;;  %v1491_v48 = vsub.s32 5, %v4082_v6 }
 0x6ef   : > { %v1496_v3 = vrot.slane %v767_v1, %v1491_v48  ;;  %v1492_v32 = vrot.slane %v4086_v17, %v1491_v48 }
 0x6f4   : > { %1640 = vmatmul.mubr.bf16.gmra.mxu0 %v1472_v30 }
 0x79c   : > { %v1611_v2 = vpop.f32.mrf.mxu0 }
 0x79d   : > { %v1612_v9 = vadd.f32 %v1611_v2, %v1492_v32 }
 0x79e   : > { %v1613_v42 = vpop.f32.mrf.mxu0 }
 0x79f   : > { %v1614_v7 = vadd.f32 %v1613_v42, %v1496_v3  ;;  %v1650_v23 = vmax.f32 %v1612_v9, 0.0 }
 0x7a0   : > { %v1615_v5 = vpop.f32.mrf.mxu0 }
 0x7a1   : > { %v1616_v8 = vadd.f32 %v1615_v5, %v1492_v32  ;;  %v1651_v19 = vmax.f32 %v1614_v7, 0.0 }
 0x7a2   : > { %v1617_v14 = vpop.f32.mrf.mxu0 }
 0x7a3   : > { %v1618_v15 = vadd.f32 %v1617_v14, %v1496_v3  ;;  %v1652_v16 = vmax.f32 %v1616_v8, 0.0  ;;  %v1708_v8 = vsub.s32 4, %v4082_v6 }
 0x7a4   : > { %v1621_v18 = vpop.f32.mrf.mxu0 }
 0x7a5   : > { %v1653_v22 = vmax.f32 %v1618_v15, 0.0  ;;  %v1666_v28 = vpack.c.bf16 %v1652_v16, %v1650_v23  ;;  %v1622_v35 = vadd.f32 %v1621_v18, %v1492_v32  ;;  %v1709_v14 = vrot.slane %v4086_v17, %v1708_v8 }
 0x7a6   : > { %v1623_v24 = vpop.f32.mrf.mxu0 }
 0x7a7   : > { %v1667_v25 = vpack.c.bf16 %v1653_v22, %v1651_v19  ;;  %v1624_v33 = vadd.f32 %v1623_v24, %v1496_v3  ;;  %v1654_v45 = vmax.f32 %v1622_v35, 0.0 }
 0x7a8   : > { %v1625_v29 = vpop.f32.mrf.mxu0 }
 0x7a9   : > { %v1626_v34 = vadd.f32 %v1625_v29, %v1492_v32  ;;  %1838 = vmatprep.mubr.bf16.mxu1 %v1667_v25  ;;  %v1655_v43 = vmax.f32 %v1624_v33, 0.0 }
 0x7aa   : > { %v1627_v36 = vpop.f32.mrf.mxu0  ;;  %1839 = vmatmul.mubr.bf16.vlgmr.msra.gmra.mxu1 %v1666_v28 }
 0x7ab   : > { %v1628_v37 = vadd.f32 %v1627_v36, %v1496_v3  ;;  %v1656_v38 = vmax.f32 %v1626_v34, 0.0 }
 0x7ac   : > { %v1631_v39 = vpop.f32.mrf.mxu0 }
 0x7ad   : > { %v1657_v44 = vmax.f32 %v1628_v37, 0.0  ;;  %v1668_v47 = vpack.c.bf16 %v1656_v38, %v1654_v45  ;;  %v1632_v11 = vadd.f32 %v1631_v39, %v1492_v32 }
 0x7ae   : > { %v1633_v4 = vpop.f32.mrf.mxu0 }
 0x7af   : > { %v1669_v46 = vpack.c.bf16 %v1657_v44, %v1655_v43  ;;  %v1634_v51 = vadd.f32 %v1633_v4, %v1496_v3  ;;  %v1658_v59 = vmax.f32 %v1632_v11, 0.0 }
 0x7b0   : > { %v1635_v49 = vpop.f32.mrf.mxu0 }
 0x7b1   : > { %v1636_v41 = vadd.f32 %v1635_v49, %v1492_v32  ;;  %1846 = vmatprep.mubr.bf16.mxu1 %v1669_v46  ;;  %v1659_v21 = vmax.f32 %v1634_v51, 0.0 }
 0x7b2   : > { %v1637_v53 = vpop.f32.mrf.mxu0  ;;  %1847 = vmatmul.mubr.bf16.gmra.mxu1 %v1668_v47 }
 0x7b3   : > { %v1638_v54 = vadd.f32 %v1637_v53, %v1496_v3  ;;  %v1660_v55 = vmax.f32 %v1636_v41, 0.0 }
 0x7b4   : > { %v1641_v56 = vpop.f32.mrf.mxu0 }
 0x7b5   : > { %v1661_v10 = vmax.f32 %v1638_v54, 0.0  ;;  %v1670_v30 = vpack.c.bf16 %v1660_v55, %v1658_v59  ;;  %v1642_v27 = vadd.f32 %v1641_v56, %v1492_v32 }
 0x7b6   : > { %v1643_v12 = vpop.f32.mrf.mxu0 }
 0x7b7   : > { %v1671_v60 = vpack.c.bf16 %v1661_v10, %v1659_v21  ;;  %v1644_v61 = vadd.f32 %v1643_v12, %v1496_v3  ;;  %v1662_v42 = vmax.f32 %v1642_v27, 0.0 }
 0x7b8   : > { %v1645_v20 = vpop.f32.mrf.mxu0 }
 0x7b9   : > { %v1646_v62 = vadd.f32 %v1645_v20, %v1492_v32  ;;  %1854 = vmatprep.mubr.bf16.mxu1 %v1671_v60  ;;  %v1663_v1 = vmax.f32 %v1644_v61, 0.0 }
 0x7ba   : > { %v1647_v63 = vpop.f32.mrf.mxu0  ;;  %1855 = vmatmul.mubr.bf16.gmra.mxu1 %v1670_v30 }
 0x7bb   : > { %v1648_v0 = vadd.f32 %v1647_v63, %v1496_v3  ;;  %v1664_v48 = vmax.f32 %v1646_v62, 0.0 }
 0x7bd   : > { %v1665_v2 = vmax.f32 %v1648_v0, 0.0  ;;  %v1672_v7 = vpack.c.bf16 %v1664_v48, %v1662_v42 }
 0x7bf   : > { %v1673_v5 = vpack.c.bf16 %v1665_v2, %v1663_v1 }
 0x7c1   : > { %1862 = vmatprep.mubr.bf16.mxu1 %v1673_v5 }
 0x7c2   : > { %1863 = vmatmul.mubr.bf16.gmra.mxu1 %v1672_v7 }
 0x86a   : > { %v2478_v9 = vpop.f32.mrf.mxu1 }
 0x86c   : > { %v2479_v15 = vpop.f32.mrf.mxu1 }
 0x86d   : > { %v2480_v16 = vadd.f32 %v2479_v15, %v2478_v9 }
 0x86e   : > { %v2481_v18 = vpop.f32.mrf.mxu1 }
 0x86f   : > { %v1841_v32 = vadd.f32 %v2480_v16, %v1709_v14 }
 0x870   : > { %v2482_v19 = vpop.f32.mrf.mxu1 }
 0x871   : > { %v2483_v22 = vadd.f32 %v2482_v19, %v2481_v18  ;;  %v1871_v3 = vadd.f32 %v1841_v32, %v4093_v40 }
 0x872   : > { %v2484_v23 = vpop.f32.mrf.mxu1 }
 0x873   : > { %v1844_v24 = vadd.f32 %v2483_v22, %v1709_v14  ;;  %1879 = vadd.xlane.f32.xlu0 %v1871_v3 }
 0x874   : > { %v2485_v25 = vpop.f32.mrf.mxu1 }
 0x875   : > { %v2486_v28 = vadd.f32 %v2485_v25, %v2484_v23  ;;  %v1872_v29 = vadd.f32 %v1844_v24, %v4095_v31 }
 0x876   : > { %v2487_v33 = vpop.f32.mrf.mxu1 }
 0x877   : > { %v1849_v34 = vadd.f32 %v2486_v28, %v1709_v14  ;;  %1881 = vadd.xlane.f32.xlu1 %v1872_v29 }
 0x878   : > { %v2488_v35 = vpop.f32.mrf.mxu1 }
 0x879   : > { %v2489_v36 = vadd.f32 %v2488_v35, %v2487_v33  ;;  %v1873_v37 = vadd.f32 %v1849_v34, %v4105_v52 }
 0x87a   : > { %v2490_v38 = vpop.f32.mrf.mxu1 }
 0x87b   : > { %v1852_v39 = vadd.f32 %v2489_v36, %v1709_v14  ;;  %1883 = vadd.xlane.f32.xlu0 %v1873_v37 }
 0x87c   : > { %v2491_v43 = vpop.f32.mrf.mxu1 }
 0x87d   : > { %v2492_v44 = vadd.f32 %v2491_v43, %v2490_v38  ;;  %v1874_v40 = vadd.f32 %v1852_v39, %v4102_v50  ;;  %v1969_v43 = vsub.s32 2, %v4082_v6 }
 0x87e   : > { %v2493_v45 = vpop.f32.mrf.mxu1 }
 0x87f   : > { %v1857_v4 = vadd.f32 %v2492_v44, %v1709_v14  ;;  %1885 = vadd.xlane.f32.xlu1 %v1874_v40 }
 0x880   : > { %v2494_v46 = vpop.f32.mrf.mxu1 }
 0x881   : > { %v2495_v47 = vadd.f32 %v2494_v46, %v2493_v45  ;;  %v1875_v31 = vadd.f32 %v1857_v4, %v4114_v58  ;;  %v1970_v46 = vrot.slane %v4086_v17, %v1969_v43 }
 0x882   : > { %v2496_v49 = vpop.f32.mrf.mxu1 }
 0x883   : > { %v1860_v51 = vadd.f32 %v2495_v47, %v1709_v14  ;;  %1887 = vadd.xlane.f32.xlu0 %v1875_v31 }
 0x884   : > { %v2497_v41 = vpop.f32.mrf.mxu1 }
 0x885   : > { %v2498_v11 = vadd.f32 %v2497_v41, %v2496_v49  ;;  %v1876_v52 = vadd.f32 %v1860_v51, %v4111_v57 }
 0x886   : > { %v2499_v53 = vpop.f32.mrf.mxu1 }
 0x887   : > { %v1865_v54 = vadd.f32 %v2498_v11, %v1709_v14  ;;  %1889 = vadd.xlane.f32.xlu1 %v1876_v52 }
 0x888   : > { %v2500_v55 = vpop.f32.mrf.mxu1 }
 0x889   : > { %v2501_v56 = vadd.f32 %v2500_v55, %v2499_v53  ;;  %v1877_v50 = vadd.f32 %v1865_v54, %v4122_v13 }
 0x88b   : > { %v1868_v21 = vadd.f32 %v2501_v56, %v1709_v14  ;;  %1891 = vadd.xlane.f32.xlu0 %v1877_v50 }
 0x88d   : > { %v1878_v10 = vadd.f32 %v1868_v21, %v4120_v26 }
 0x88f   : > { %1893 = vadd.xlane.f32.xlu1 %v1878_v10 }
 0x8fc   : > { %v1880_v58 = vpop.xlane.xlu0 %1879 }
 0x8fd   : > { %v1895_v59 = vmul.f32 0.0078125, %v1880_v58 }
 0x8ff   : > { %v1903_v12 = vsub.f32 %v1871_v3, %v1895_v59 }
 0x900   : > { %v1882_v60 = vpop.xlane.xlu1 %1881 }
 0x901   : > { %v1896_v30 = vmul.f32 0.0078125, %v1882_v60  ;;  %v1911_v20 = vmul.f32 %v1903_v12, %v1903_v12 }
 0x903   : > { %v4145_v61 = vsub.f32 %v1872_v29, %v1896_v30  ;;  %1919 = vadd.xlane.f32.xlu0 %v1911_v20 }
 0x904   : > { %v1884_v57 = vpop.xlane.xlu0 %1883 }
 0x905   : > { %v1897_v62 = vmul.f32 0.0078125, %v1884_v57  ;;  %v1912_v27 = vmul.f32 %v4145_v61, %v4145_v61 }
 0x907   : > { %v4149_v13 = vsub.f32 %v1873_v37, %v1897_v62  ;;  %1921 = vadd.xlane.f32.xlu1 %v1912_v27 }
 0x908   : > { %v1886_v63 = vpop.xlane.xlu1 %1885 }
 0x909   : > { %v1898_v26 = vmul.f32 0.0078125, %v1886_v63  ;;  %v1913_v0 = vmul.f32 %v4149_v13, %v4149_v13 }
 0x90b   : > { %v4153_v48 = vsub.f32 %v1874_v40, %v1898_v26  ;;  %1923 = vadd.xlane.f32.xlu0 %v1913_v0  ;;  %v1981_v40 = vsub.s32 3, %v4082_v6 }
 0x90c   : > { %v1888_v1 = vpop.xlane.xlu0 %1887 }
 0x90d   : > { %v1899_v2 = vmul.f32 0.0078125, %v1888_v1  ;;  %v1914_v42 = vmul.f32 %v4153_v48, %v4153_v48  ;;  %v1982_v49 = vrot.slane %v4086_v17, %v1981_v40 }
 0x90f   : > { %v4157_v5 = vsub.f32 %v1875_v31, %v1899_v2  ;;  %1925 = vadd.xlane.f32.xlu1 %v1914_v42 }
 0x910   : > { %v1890_v7 = vpop.xlane.xlu1 %1889 }
 0x911   : > { %v1900_v8 = vmul.f32 0.0078125, %v1890_v7  ;;  %v1915_v9 = vmul.f32 %v4157_v5, %v4157_v5 }
 0x913   : > { %v4161_v14 = vsub.f32 %v1876_v52, %v1900_v8  ;;  %1927 = vadd.xlane.f32.xlu0 %v1915_v9 }
 0x914   : > { %v1892_v15 = vpop.xlane.xlu0 %1891 }
 0x915   : > { %v1901_v16 = vmul.f32 0.0078125, %v1892_v15  ;;  %v1916_v18 = vmul.f32 %v4161_v14, %v4161_v14 }
 0x917   : > { %v4165_v32 = vsub.f32 %v1877_v50, %v1901_v16  ;;  %1929 = vadd.xlane.f32.xlu1 %v1916_v18 }
 0x918   : > { %v1894_v19 = vpop.xlane.xlu1 %1893 }
 0x919   : > { %v1902_v22 = vmul.f32 0.0078125, %v1894_v19  ;;  %v1917_v3 = vmul.f32 %v4165_v32, %v4165_v32 }
 0x91b   : > { %v4169_v23 = vsub.f32 %v1878_v10, %v1902_v22  ;;  %1931 = vadd.xlane.f32.xlu0 %v1917_v3 }
 0x91d   : > { %v1918_v24 = vmul.f32 %v4169_v23, %v4169_v23 }
 0x91f   : > { %1933 = vadd.xlane.f32.xlu1 %v1918_v24 }
 0x98c   : > { %v1920_v25 = vpop.xlane.xlu0 %1919 }
 0x98d   : > { %v1935_v28 = vmul.f32 0.0078125, %v1920_v25 }
 0x98f   : > { %v1943_v29 = vadd.f32 1e-05, %v1935_v28 }
 0x990   : > { %v1922_v33 = vpop.xlane.xlu1 %1921 }
 0x991   : > { %2907 = vrsqrt.f32 %v1943_v29  ;;  %v1936_v34 = vmul.f32 0.0078125, %v1922_v33 }
 0x993   : > { %v1944_v35 = vadd.f32 1e-05, %v1936_v34 }
 0x994   : > { %v1924_v36 = vpop.xlane.xlu0 %1923 }
 0x995   : > { %2909 = vrsqrt.f32 %v1944_v35  ;;  %v1937_v37 = vmul.f32 0.0078125, %v1924_v36 }
 0x997   : > { %v1945_v38 = vadd.f32 1e-05, %v1937_v37 }
 0x998   : > { %v1926_v39 = vpop.xlane.xlu1 %1925 }
 0x999   : > { %2911 = vrsqrt.f32 %v1945_v38  ;;  %v1938_v44 = vmul.f32 0.0078125, %v1926_v39 }
 0x99b   : > { %v1946_v45 = vadd.f32 1e-05, %v1938_v44 }
 0x99c   : > { %v1928_v4 = vpop.xlane.xlu0 %1927 }
 0x99d   : > { %2913 = vrsqrt.f32 %v1946_v45  ;;  %v1939_v47 = vmul.f32 0.0078125, %v1928_v4 }
 0x99e   : > { %v2908_v31 = vpop.eup %2907 }
 0x99f   : > { %v1959_v51 = vmul.f32 %v2908_v31, %v1903_v12  ;;  %v1947_v41 = vadd.f32 1e-05, %v1939_v47 }
 0x9a0   : > { %v1930_v11 = vpop.xlane.xlu1 %1929 }
 0x9a1   : > { %v1971_v52 = vmul.f32 %v1970_v46, %v1959_v51  ;;  %2915 = vrsqrt.f32 %v1947_v41  ;;  %v1940_v53 = vmul.f32 0.0078125, %v1930_v11 }
 0x9a2   : > { %v2910_v54 = vpop.eup %2909 }
 0x9a3   : > { %v1983_v55 = vadd.f32 %v1982_v49, %v1971_v52  ;;  %v1960_v6 = vmul.f32 %v2910_v54, %v4145_v61  ;;  %v1948_v56 = vadd.f32 1e-05, %v1940_v53 }
 0x9a4   : > { %v1932_v50 = vpop.xlane.xlu0 %1931 }
 0x9a5   : > { %1991 = vst [vmem:[%s3892_s19] sm:$0xff] %v1983_v55  ;;  %v1972_v21 = vmul.f32 %v1970_v46, %v1960_v6  ;;  %2917 = vrsqrt.f32 %v1948_v56  ;;  %v1941_v10 = vmul.f32 0.0078125, %v1932_v50 }
 0x9a6   : > { %v2912_v58 = vpop.eup %2911 }
 0x9a7   : > { %v1984_v17 = vadd.f32 %v1982_v49, %v1972_v21  ;;  %v1961_v59 = vmul.f32 %v2912_v58, %v4149_v13  ;;  %v1949_v12 = vadd.f32 1e-05, %v1941_v10 }
 0x9a8   : > { %v1934_v60 = vpop.xlane.xlu1 %1933 }
 0x9a9   : > { %1992 = vst [vmem:[%s3892_s19 + $0x8] sm:$0xff] %v1984_v17  ;;  %v1973_v30 = vmul.f32 %v1970_v46, %v1961_v59  ;;  %2919 = vrsqrt.f32 %v1949_v12  ;;  %v1942_v20 = vmul.f32 0.0078125, %v1934_v60 }
 0x9aa   : > { %v2914_v61 = vpop.eup %2913 }
 0x9ab   : > { %v1985_v57 = vadd.f32 %v1982_v49, %v1973_v30  ;;  %v1962_v62 = vmul.f32 %v2914_v61, %v4153_v48  ;;  %v1950_v27 = vadd.f32 1e-05, %v1942_v20 }
 0x9ad   : > { %1993 = vst [vmem:[%s3892_s19 + $0x10] sm:$0xff] %v1985_v57  ;;  %v1974_v63 = vmul.f32 %v1970_v46, %v1962_v62  ;;  %2921 = vrsqrt.f32 %v1950_v27 }
 0x9ae   : > { %v2916_v26 = vpop.eup %2915 }
 0x9af   : > { %v1986_v13 = vadd.f32 %v1982_v49, %v1974_v63  ;;  %v1963_v0 = vmul.f32 %v2916_v26, %v4157_v5 }
 0x9b1   : > { %1994 = vst [vmem:[%s3892_s19 + $0x18] sm:$0xff] %v1986_v13  ;;  %v1975_v1 = vmul.f32 %v1970_v46, %v1963_v0 }
 0x9b2   : > { %v2918_v2 = vpop.eup %2917 }
 0x9b3   : > { %v1987_v42 = vadd.f32 %v1982_v49, %v1975_v1  ;;  %v1964_v7 = vmul.f32 %v2918_v2, %v4161_v14 }
 0x9b5   : > { %1995 = vst [vmem:[%s3892_s19 + $0x20] sm:$0xff] %v1987_v42  ;;  %v1976_v48 = vmul.f32 %v1970_v46, %v1964_v7 }
 0x9b6   : > { %v2920_v8 = vpop.eup %2919 }
 0x9b7   : > { %v1988_v9 = vadd.f32 %v1982_v49, %v1976_v48  ;;  %v1965_v15 = vmul.f32 %v2920_v8, %v4165_v32 }
 0x9b9   : > { %1996 = vst [vmem:[%s3892_s19 + $0x28] sm:$0xff] %v1988_v9  ;;  %v1977_v5 = vmul.f32 %v1970_v46, %v1965_v15 }
 0x9ba   : > { %v2922_v16 = vpop.eup %2921 }
 0x9bb   : > { %v1989_v18 = vadd.f32 %v1982_v49, %v1977_v5  ;;  %v1966_v19 = vmul.f32 %v2922_v16, %v4169_v23 }
 0x9bd   : > { %1997 = vst [vmem:[%s3892_s19 + $0x30] sm:$0xff] %v1989_v18  ;;  %v1978_v14 = vmul.f32 %v1970_v46, %v1966_v19 }
 0x9bf   : > { %v1990_v32 = vadd.f32 %v1982_v49, %v1978_v14 }
 0x9c1   : > { %1998 = vst [vmem:[%s3892_s19 + $0x38] sm:$0xff] %v1990_v32 }
 0x9c2   : > { %3188 = shalt.err (!%p3185_p3)
}
 0x9c3   : > { %s3189_s26 = scalar_lea.hbm %s4197_s3, 1024  ;;  %s3193_s11 = scalar_lea.hbm %s4441_s4, 4096 }
 0x9c4   : > { %p3190_p10 = scmp.ne.s32.totalorder %s4197_s3, %s3189_s26  ;;  %p3194_p5 = scmp.lt.s32.totalorder %s4197_s3, %s4441_s4 }
 0x9c5   : > { %p3195_p2 = scmp.lt.s32.totalorder %s3193_s11, %s3189_s26 }
 0x9c6   : > { %p3191_p11 = pnand %p3190_p10, %p4442_p13 }
 0x9c7   : > { %p3196_p0 = por %p3195_p2, %p3194_p5 }
 0x9c8   : > { %p3192_p9 = pneg %p3191_p11 }
 0x9ca   : > { %p3197_p1 = pnand %p3196_p0, %p3192_p9 }
 0x9cc   : > { %3200 = shalt.err (!%p3197_p1)
}
 0x9cd   : > { %s3376_s17 = smov 128   ;;  %s3377_s29 = smov 8  }
 0x9ce   : > { %2616 = dma.vmem_to_hbm [thread:$0]  (%p4442_p13), %s4199_s12, 1024, %s4197_s3, %s2000_s22, %s3376_s17, %s3376_s17, %s3377_s29  }
 0x9cf PF: > { %s4443_s28 = sld [smem:[#allocation38_spill]] }
 0x9d0   : > { %s4444_s20 = sld [smem:[#allocation30_spill]] }
 0x9d1   : > { %s4445_s19 = sld [smem:[#allocation45_spill]] }
 0x9d5   : > { %p2651_p7 = scmp.ge.s32.totalorder %s4443_s28, 2 }
 0x9d6   : > { %s2030_s5 = sand.u32 1, %s4444_s20  }
 0x9d7   : > { %p4446_p12 = scmp.ne.s32.totalorder %s4445_s19, 0  ;;  %s2031_s24 = scalar_lea.sflag [#allocation4], %s2030_s5 }
 0x9d9   : > { %p2647_p4 = pnand %p2651_p7, %p4446_p12 }
 0x9db   : > { %p2648_p8 = pneg %p2647_p4 }
 0x9dd   : > { %3294 = dma.done.wait (%p2648_p8), %s2031_s24, 1024  }
 0x9de   : > { %3296 = vsyncadd (%p2648_p8), %s2031_s24, 4294966272  ;;  %s37_s24 = sadd.s32 1, %s4443_s28   ;;  %s4448_s30 = sld [smem:[#allocation26_spill]] }
 0x9df   : > { %p4230_p6 = scmp.ge.s32.totalorder %s37_s24, 10   ;;  %s4449_s10 = sld [smem:[#allocation27_spill]] }
 0x9e0   : > { %s4450_s11 = sld [smem:[#allocation51_spill]] }
 0x9e1   : > { %s4451_s12 = sld [smem:[#allocation28_spill]] }
 0x9e2   : > { %s4452_s13 = sld [smem:[#allocation29_spill]] }
 0x9e3   : > { %s4453_s14 = sld [smem:[#allocation48_spill]] }
 0x9e4   : > { %s4454_s18 = sld [smem:[#allocation31_spill]] }
 0x9e5   : > { %s4455_s16 = sld [smem:[#allocation32_spill]] }
 0x9e6   : > { %s4456_s17 = sld [smem:[#allocation46_spill]] }
 0x9e7   : > { %s4457_s19 = sld [smem:[#allocation36_spill]] }
 0x9e8   : > { %s4458_s20 = sld [smem:[#allocation37_spill]] }
 0x9e9   : > { %s4459_s0 = sld [smem:[#allocation40_spill]] }
 0x9ea   : > { %s4460_s22 = sld [smem:[#allocation41_spill]]  ;;  %s4463_s15 = smov %s4454_s18 }
 0x9eb   : > { %s4461_s23 = sld [smem:[#allocation43_spill]]  ;;  %s4464_s18 = smov %s3347_s21 }
 0x9ec   :  { %36 = sbr.rel (!%p4230_p6) target bundleno = 30 (0x1e), region = 201 }
 0x9ef   : > { %s4465_s21 = smov %s4459_s0 }
 0x9f1   :  { %2036 = vsyncpa [#allocation3], 1 }
 0x9f2   :  { %2038 = vsyncpa [#allocation3 + $0x1], 1 }
 0x9f3   :  { %2039 = vsyncpa [#allocation6], 1 }
 0x9f4   :  { %2041 = vsyncpa [#allocation6 + $0x1], 1 }
 0x9f5   :  { %2042 = vsyncpa [#allocation9], 1 }
 0x9f6   :  { %2044 = vsyncpa [#allocation9 + $0x1], 1 }
 0x9f7   :  { %2045 = vsyncpa [#allocation12], 1 }
 0x9f8   :  { %2047 = vsyncpa [#allocation12 + $0x1], 1 }
 0x9f9   :  { %2048 = vsyncpa [#allocation15], 1 }
 0x9fa   :  { %2050 = vsyncpa [#allocation15 + $0x1], 1 }
 0x9fb   :  { %2051 = vsyncpa [#allocation4], 1 }
 0x9fc   :  { %2053 = vsyncpa [#allocation4 + $0x1], 1 }

</bundles_post_ra>
